<compile_context>
chip_gen: v7x
topology: tpu7x:2x2x1
jax: 0.10.0
libtpu: 0.0.40
codegen_flags: <defaults>
</compile_context>

<pallas_src>
import functools
import math

import jax
import jax.numpy as jnp
from jax.experimental import pallas as pl
from jax.experimental.pallas import tpu as pltpu


# ----------------------------- kernel helpers -----------------------------

def _layer_norm(x, gamma, beta, eps):
    mu = jnp.mean(x, axis=-1, keepdims=True)
    var = jnp.mean((x - mu) ** 2, axis=-1, keepdims=True)
    return (x - mu) * jax.lax.rsqrt(var + eps) * gamma + beta


def _encoder_layer_kernel(x_ref,
                          wqkv_ref, bqkv_ref, wo_ref, bo_ref,
                          g1_ref, be1_ref, w1_ref, b1_ref, w2_ref, b2_ref,
                          g2_ref, be2_ref, gf_ref, bf_ref,
                          o_ref, acc_ref,
                          *, d_model, nhead, eps):
    """One encoder layer per grid step; activation carried in VMEM scratch."""
    layer = pl.program_id(1)
    num_layers = pl.num_programs(1)
    S = acc_ref.shape[0]
    dh = d_model // nhead

    @pl.when(layer == 0)
    def _():
        acc_ref[...] = x_ref[...]

    x = acc_ref[...]                                     # (S, D) f32

    # ---- fused QKV projection: one (S,D)x(D,3D) MXU matmul (scale folded in) ----
    qkv = jnp.dot(x.astype(jnp.bfloat16), wqkv_ref[...],
                  preferred_element_type=jnp.float32) + bqkv_ref[...]   # (S, 3D) f32
    qkv_b = qkv.astype(jnp.bfloat16)

    def split_heads(t):  # (S, D) head-major columns -> (H, S, dh), leading batch
        return jnp.stack([t[:, h * dh:(h + 1) * dh] for h in range(nhead)], axis=0)

    q = split_heads(qkv_b[:, :d_model])                  # (H, S, dh) bf16, pre-scaled
    k = split_heads(qkv_b[:, d_model:2 * d_model])
    v = split_heads(qkv_b[:, 2 * d_model:3 * d_model])

    # ---- head-batched attention (leading batch dim, documented flash pattern) ----
    s = jnp.einsum('hqd,hkd->hqk', q, k,
                   preferred_element_type=jnp.float32)   # (H, S, S) f32
    s = s - jnp.max(s, axis=-1, keepdims=True)
    p = jnp.exp(s)
    p = p * pl.reciprocal(jnp.sum(p, axis=-1, keepdims=True), approx=True)

    ctx = jnp.einsum('hqk,hkd->hqd', p.astype(jnp.bfloat16), v,
                     preferred_element_type=jnp.float32)  # (H, S, dh) f32

    # head-concat back to a lane-dense (S, D) tile, then a single K=D out-projection
    ctx_flat = jnp.concatenate([ctx[h] for h in range(nhead)], axis=-1)  # (S, D)
    attn = jnp.dot(ctx_flat.astype(jnp.bfloat16), wo_ref[...],
                   preferred_element_type=jnp.float32) + bo_ref[...]

    # residual + LayerNorm (norm_first=False -> post-norm), stats in f32
    x1 = _layer_norm(x + attn, g1_ref[...], be1_ref[...], eps)

    # ---- feed-forward (relu), bf16 MXU inputs, f32 accumulation ----
    hdn = jnp.maximum(
        jnp.dot(x1.astype(jnp.bfloat16), w1_ref[...],
                preferred_element_type=jnp.float32) + b1_ref[...], 0.0)
    ff = jnp.dot(hdn.astype(jnp.bfloat16), w2_ref[...],
                 preferred_element_type=jnp.float32) + b2_ref[...]
    x2 = _layer_norm(x1 + ff, g2_ref[...], be2_ref[...], eps)

    acc_ref[...] = x2

    @pl.when(layer == num_layers - 1)
    def _():
        o_ref[...] = _layer_norm(x2, gf_ref[...], bf_ref[...], eps)


# ----------------------------- wrapper -----------------------------

def um_transformer_encoder_pallas(src, stacked_params, final_gamma, final_beta,
                                  *, num_layers, d_model, nhead, dim_feedforward, eps):
    """PyTorch does permute(1,0,2) -> layers -> norm -> permute(1,0,2); attention is
    per-batch over the sequence, so computing directly in (B, S, D) is equivalent."""
    B, S, D = src.shape
    kern = functools.partial(_encoder_layer_kernel,
                             d_model=d_model, nhead=nhead, eps=eps)

    def layer_spec(a):           # stacked (L, ...) -> stream one layer per grid step
        shape = tuple(a.shape[1:])
        nd = len(shape)
        return pl.BlockSpec((pl.Squeezed(),) + shape,
                            lambda b, l, _n=nd: (l,) + (0,) * _n)

    def const_spec(a):           # resident across the whole grid
        nd = a.ndim
        return pl.BlockSpec(tuple(a.shape), lambda b, l, _n=nd: (0,) * _n)

    act_spec = pl.BlockSpec((pl.Squeezed(), S, D), lambda b, l: (b, 0, 0))

    fg = final_gamma.reshape(1, D)
    fb = final_beta.reshape(1, D)

    in_specs = ([act_spec]
                + [layer_spec(a) for a in stacked_params]
                + [const_spec(fg), const_spec(fb)])

    # advisory scheduler hint
    flops = 2 * B * num_layers * (S * D * 3 * D          # qkv projection
                                  + 2 * S * S * D        # qk^T and pv
                                  + S * D * D            # out projection
                                  + 2 * S * D * dim_feedforward)  # ffn
    transcendentals = B * num_layers * nhead * S * S
    bytes_accessed = (B * sum(int(a.size) * a.dtype.itemsize for a in stacked_params)
                      + 2 * int(src.size) * 4)

    return pl.pallas_call(
        kern,
        out_shape=jax.ShapeDtypeStruct((B, S, D), jnp.float32),
        grid=(B, num_layers),
        in_specs=in_specs,
        out_specs=act_spec,
        scratch_shapes=[pltpu.VMEM((S, D), jnp.float32)],
        compiler_params=pltpu.CompilerParams(
            dimension_semantics=("parallel", "arbitrary")),
        cost_estimate=pl.CostEstimate(flops=flops,
                                      transcendentals=transcendentals,
                                      bytes_accessed=bytes_accessed),
    )(src, *stacked_params, fg, fb)


# ----------------------------- parameter prep -----------------------------

def init_layer_params(key, d_model, dim_feedforward):
    """PyTorch-orientation parameters of one TransformerEncoderLayer."""
    ks = jax.random.split(key, 6)
    scale = 0.05
    return dict(
        in_proj_w=scale * jax.random.normal(ks[0], (3 * d_model, d_model), jnp.float32),
        in_proj_b=scale * jax.random.normal(ks[1], (3 * d_model,), jnp.float32),
        out_proj_w=scale * jax.random.normal(ks[2], (d_model, d_model), jnp.float32),
        out_proj_b=scale * jax.random.normal(ks[3], (d_model,), jnp.float32),
        ln1_g=jnp.ones((d_model,), jnp.float32),
        ln1_b=jnp.zeros((d_model,), jnp.float32),
        lin1_w=scale * jax.random.normal(ks[4], (dim_feedforward, d_model), jnp.float32),
        lin1_b=jnp.zeros((dim_feedforward,), jnp.float32),
        lin2_w=scale * jax.random.normal(ks[5], (d_model, dim_feedforward), jnp.float32),
        lin2_b=jnp.zeros((d_model,), jnp.float32),
        ln2_g=jnp.ones((d_model,), jnp.float32),
        ln2_b=jnp.zeros((d_model,), jnp.float32),
    )


def prepare_stacked_params(layer_params, *, d_model, nhead):
    """Stack per-layer params along a leading layer axis, pre-transpose to `x @ w`
    orientation, concatenate q/k/v into one (D, 3D) weight (1/sqrt(dh) folded into
    the q projection), and cast the MXU weight operands to bf16."""
    dh = d_model // nhead
    scale = 1.0 / math.sqrt(dh)

    def per_layer(p):
        wq = p['in_proj_w'][:d_model]
        wk = p['in_proj_w'][d_model:2 * d_model]
        wv = p['in_proj_w'][2 * d_model:]
        wqkv = jnp.concatenate([(scale * wq).T, wk.T, wv.T], axis=1)      # (D, 3D)
        bqkv = jnp.concatenate([scale * p['in_proj_b'][:d_model],
                                p['in_proj_b'][d_model:]], axis=0).reshape(1, 3 * d_model)
        return (wqkv, bqkv,
                p['out_proj_w'].T, p['out_proj_b'].reshape(1, -1),
                p['ln1_g'].reshape(1, -1), p['ln1_b'].reshape(1, -1),
                p['lin1_w'].T, p['lin1_b'].reshape(1, -1),
                p['lin2_w'].T, p['lin2_b'].reshape(1, -1),
                p['ln2_g'].reshape(1, -1), p['ln2_b'].reshape(1, -1))

    cols = list(zip(*[per_layer(p) for p in layer_params]))
    stacked = [jnp.stack(c, axis=0) for c in cols]
    bf16_idx = {0, 2, 6, 8}                 # wqkv, wo, w1, w2
    # TODO(synk): on v7x these could optionally be fp8 for extra MXU/DMA headroom.
    return tuple(a.astype(jnp.bfloat16) if i in bf16_idx else a
                 for i, a in enumerate(stacked))


# ----------------------------- pure-JAX (f32) reference -----------------------------

def um_transformer_encoder_ref(src, layer_params, final_gamma, final_beta,
                               *, d_model, nhead, eps):
    H, dh = nhead, d_model // nhead
    B, S, _ = src.shape
    x = src
    for p in layer_params:
        qkv = jnp.einsum('bsd,ed->bse', x, p['in_proj_w']) + p['in_proj_b']
        q, k, v = jnp.split(qkv, 3, axis=-1)
        q = q.reshape(B, S, H, dh)
        k = k.reshape(B, S, H, dh)
        v = v.reshape(B, S, H, dh)
        s = jnp.einsum('bqhd,bkhd->bhqk', q, k) / math.sqrt(dh)
        pr = jax.nn.softmax(s, axis=-1)
        ctx = jnp.einsum('bhqk,bkhd->bqhd', pr, v).reshape(B, S, d_model)
        attn = jnp.einsum('bsd,ed->bse', ctx, p['out_proj_w']) + p['out_proj_b']
        x1 = _layer_norm(x + attn, p['ln1_g'], p['ln1_b'], eps)
        hdn = jnp.maximum(jnp.einsum('bsd,fd->bsf', x1, p['lin1_w']) + p['lin1_b'], 0.0)
        ff = jnp.einsum('bsf,df->bsd', hdn, p['lin2_w']) + p['lin2_b']
        x = _layer_norm(x1 + ff, p['ln2_g'], p['ln2_b'], eps)
    return _layer_norm(x, final_gamma, final_beta, eps)


# ----------------------------- main -----------------------------

if __name__ == "__main__":
    B, S = 2, 8
    d_model, nhead, dim_feedforward = 32, 4, 64
    num_layers = 2
    eps = 1e-12

    key = jax.random.PRNGKey(0)
    k_x, *k_layers = jax.random.split(key, 1 + num_layers)

    src = jax.random.normal(k_x, (B, S, d_model), jnp.float32)
    layer_params = [init_layer_params(k, d_model, dim_feedforward) for k in k_layers]
    final_gamma = jnp.ones((d_model,), jnp.float32)
    final_beta = jnp.zeros((d_model,), jnp.float32)

    stacked = prepare_stacked_params(layer_params, d_model=d_model, nhead=nhead)

    out = um_transformer_encoder_pallas(
        src, stacked, final_gamma, final_beta,
        num_layers=num_layers, d_model=d_model, nhead=nhead,
        dim_feedforward=dim_feedforward, eps=eps)
    out = jax.block_until_ready(out)

    ref = um_transformer_encoder_ref(
        src, layer_params, final_gamma, final_beta,
        d_model=d_model, nhead=nhead, eps=eps)
    ref = jax.block_until_ready(ref)

    assert out.shape == (B, S, d_model)
    max_err = float(jnp.max(jnp.abs(out - ref)))
    # Kernel uses bf16 MXU inputs (f32 accumulation) and an approximate softmax
    # reciprocal vs a pure-f32 reference, hence the loosened tolerance.
    assert jnp.allclose(out, ref, atol=3e-2, rtol=3e-2), max_err

    print("KERNEL_OK")
</pallas_src>

<mosaic_0001>
module attributes {stable_mosaic.version = 11 : i64} {
  func.func @_encoder_layer_kernel(%arg0: i32, %arg1: i32, %arg2: memref<1x8x32xf32, #tpu.memory_space<vmem>>, %arg3: memref<1x32x96xbf16, #tpu.memory_space<vmem>>, %arg4: memref<1x1x96xf32, #tpu.memory_space<vmem>>, %arg5: memref<1x32x32xbf16, #tpu.memory_space<vmem>>, %arg6: memref<1x1x32xf32, #tpu.memory_space<vmem>>, %arg7: memref<1x1x32xf32, #tpu.memory_space<vmem>>, %arg8: memref<1x1x32xf32, #tpu.memory_space<vmem>>, %arg9: memref<1x32x64xbf16, #tpu.memory_space<vmem>>, %arg10: memref<1x1x64xf32, #tpu.memory_space<vmem>>, %arg11: memref<1x64x32xbf16, #tpu.memory_space<vmem>>, %arg12: memref<1x1x32xf32, #tpu.memory_space<vmem>>, %arg13: memref<1x1x32xf32, #tpu.memory_space<vmem>>, %arg14: memref<1x1x32xf32, #tpu.memory_space<vmem>>, %arg15: memref<1x32xf32, #tpu.memory_space<vmem>>, %arg16: memref<1x32xf32, #tpu.memory_space<vmem>>, %arg17: memref<1x8x32xf32, #tpu.memory_space<vmem>>, %arg18: memref<8x32xf32, #tpu.memory_space<vmem>>) attributes {dimension_semantics = [#tpu.dimension_semantics<parallel>, #tpu.dimension_semantics<arbitrary>], iteration_bounds = array<i64: 2, 2>, scalar_prefetch = 0 : i64, scratch_operands = 1 : i64, tpu.core_type = #tpu.core_type<tc>, window_params = [{transform_indices = @transform_0, window_bounds = array<i64: 1, 8, 32>}, {transform_indices = @transform_1, window_bounds = array<i64: 1, 32, 96>}, {transform_indices = @transform_2, window_bounds = array<i64: 1, 1, 96>}, {transform_indices = @transform_3, window_bounds = array<i64: 1, 32, 32>}, {transform_indices = @transform_4, window_bounds = array<i64: 1, 1, 32>}, {transform_indices = @transform_5, window_bounds = array<i64: 1, 1, 32>}, {transform_indices = @transform_6, window_bounds = array<i64: 1, 1, 32>}, {transform_indices = @transform_7, window_bounds = array<i64: 1, 32, 64>}, {transform_indices = @transform_8, window_bounds = array<i64: 1, 1, 64>}, {transform_indices = @transform_9, window_bounds = array<i64: 1, 64, 32>}, {transform_indices = @transform_10, window_bounds = array<i64: 1, 1, 32>}, {transform_indices = @transform_11, window_bounds = array<i64: 1, 1, 32>}, {transform_indices = @transform_12, window_bounds = array<i64: 1, 1, 32>}, {pipeline_mode = #tpu.pipeline_mode<synchronous>, transform_indices = @transform_13, window_bounds = array<i64: 1, 32>}, {pipeline_mode = #tpu.pipeline_mode<synchronous>, transform_indices = @transform_14, window_bounds = array<i64: 1, 32>}, {transform_indices = @transform_15, window_bounds = array<i64: 1, 8, 32>}]} {
    %c0_i32 = arith.constant 0 : i32
    %0 = arith.cmpi eq, %arg1, %c0_i32 : i32
    %1 = arith.extui %0 : i1 to i32
    %c0_i32_0 = arith.constant 0 : i32
    %2 = arith.cmpi ne, %1, %c0_i32_0 : i32
    scf.if %2 {
      %c0_59 = arith.constant 0 : index
      %c0_60 = arith.constant 0 : index
      %c0_61 = arith.constant 0 : index
      %149 = vector.load %arg2[%c0_59, %c0_60, %c0_61] : memref<1x8x32xf32, #tpu.memory_space<vmem>>, vector<1x8x32xf32>
      %150 = vector.shape_cast %149 : vector<1x8x32xf32> to vector<8x32xf32>
      %c0_62 = arith.constant 0 : index
      %c0_63 = arith.constant 0 : index
      %151 = vector.load %arg18[%c0_62, %c0_63] : memref<8x32xf32, #tpu.memory_space<vmem>>, vector<8x32xf32>
      tpu.vector_store %arg18[%c0_62, %c0_63], %150 {strides = array<i32>} : memref<8x32xf32, #tpu.memory_space<vmem>>, vector<8x32xf32>,
    } else {
    }
    %c0 = arith.constant 0 : index
    %c0_1 = arith.constant 0 : index
    %3 = vector.load %arg18[%c0, %c0_1] : memref<8x32xf32, #tpu.memory_space<vmem>>, vector<8x32xf32>
    %4 = arith.truncf %3 : vector<8x32xf32> to vector<8x32xbf16>
    %c0_2 = arith.constant 0 : index
    %c0_3 = arith.constant 0 : index
    %c0_4 = arith.constant 0 : index
    %5 = vector.load %arg3[%c0_2, %c0_3, %c0_4] : memref<1x32x96xbf16, #tpu.memory_space<vmem>>, vector<1x32x96xbf16>
    %6 = vector.shape_cast %5 : vector<1x32x96xbf16> to vector<32x96xbf16>
    %cst = arith.constant dense<0.000000e+00> : vector<8x96xf32>
    %7 = tpu.matmul %4, %6, %cst {dimension_numbers = #tpu.dot_dimension_numbers<[1], [0], [0], [1], [0, 0, 1, 1], [], []>} : vector<8x32xbf16>, vector<32x96xbf16>, vector<8x96xf32> -> vector<8x96xf32>
    %c0_5 = arith.constant 0 : index
    %c0_6 = arith.constant 0 : index
    %c0_7 = arith.constant 0 : index
    %8 = vector.load %arg4[%c0_5, %c0_6, %c0_7] : memref<1x1x96xf32, #tpu.memory_space<vmem>>, vector<1x1x96xf32>
    %9 = vector.shape_cast %8 : vector<1x1x96xf32> to vector<1x96xf32>
    %10 = vector.broadcast %9 : vector<1x96xf32> to vector<8x96xf32>
    %11 = arith.addf %7, %10 : vector<8x96xf32>
    %12 = arith.truncf %11 : vector<8x96xf32> to vector<8x96xbf16>
    %13 = vector.extract_strided_slice %12 {offsets = [0, 0], sizes = [8, 32], strides = [1, 1]} : vector<8x96xbf16> to vector<8x32xbf16>
    %14 = vector.extract_strided_slice %13 {offsets = [0, 0], sizes = [8, 8], strides = [1, 1]} : vector<8x32xbf16> to vector<8x8xbf16>
    %15 = vector.extract_strided_slice %13 {offsets = [0, 8], sizes = [8, 8], strides = [1, 1]} : vector<8x32xbf16> to vector<8x8xbf16>
    %16 = vector.extract_strided_slice %13 {offsets = [0, 16], sizes = [8, 8], strides = [1, 1]} : vector<8x32xbf16> to vector<8x8xbf16>
    %17 = vector.extract_strided_slice %13 {offsets = [0, 24], sizes = [8, 8], strides = [1, 1]} : vector<8x32xbf16> to vector<8x8xbf16>
    %18 = vector.shape_cast %14 : vector<8x8xbf16> to vector<1x8x8xbf16>
    %19 = vector.shape_cast %15 : vector<8x8xbf16> to vector<1x8x8xbf16>
    %20 = vector.shape_cast %16 : vector<8x8xbf16> to vector<1x8x8xbf16>
    %21 = vector.shape_cast %17 : vector<8x8xbf16> to vector<1x8x8xbf16>
    %22 = tpu.concatenate %18, %19, %20, %21 in 0 : vector<1x8x8xbf16>, vector<1x8x8xbf16>, vector<1x8x8xbf16>, vector<1x8x8xbf16> -> vector<4x8x8xbf16>
    %23 = vector.extract_strided_slice %12 {offsets = [0, 32], sizes = [8, 32], strides = [1, 1]} : vector<8x96xbf16> to vector<8x32xbf16>
    %24 = vector.extract_strided_slice %23 {offsets = [0, 0], sizes = [8, 8], strides = [1, 1]} : vector<8x32xbf16> to vector<8x8xbf16>
    %25 = vector.extract_strided_slice %23 {offsets = [0, 8], sizes = [8, 8], strides = [1, 1]} : vector<8x32xbf16> to vector<8x8xbf16>
    %26 = vector.extract_strided_slice %23 {offsets = [0, 16], sizes = [8, 8], strides = [1, 1]} : vector<8x32xbf16> to vector<8x8xbf16>
    %27 = vector.extract_strided_slice %23 {offsets = [0, 24], sizes = [8, 8], strides = [1, 1]} : vector<8x32xbf16> to vector<8x8xbf16>
    %28 = vector.shape_cast %24 : vector<8x8xbf16> to vector<1x8x8xbf16>
    %29 = vector.shape_cast %25 : vector<8x8xbf16> to vector<1x8x8xbf16>
    %30 = vector.shape_cast %26 : vector<8x8xbf16> to vector<1x8x8xbf16>
    %31 = vector.shape_cast %27 : vector<8x8xbf16> to vector<1x8x8xbf16>
    %32 = tpu.concatenate %28, %29, %30, %31 in 0 : vector<1x8x8xbf16>, vector<1x8x8xbf16>, vector<1x8x8xbf16>, vector<1x8x8xbf16> -> vector<4x8x8xbf16>
    %33 = vector.extract_strided_slice %12 {offsets = [0, 64], sizes = [8, 32], strides = [1, 1]} : vector<8x96xbf16> to vector<8x32xbf16>
    %34 = vector.extract_strided_slice %33 {offsets = [0, 0], sizes = [8, 8], strides = [1, 1]} : vector<8x32xbf16> to vector<8x8xbf16>
    %35 = vector.extract_strided_slice %33 {offsets = [0, 8], sizes = [8, 8], strides = [1, 1]} : vector<8x32xbf16> to vector<8x8xbf16>
    %36 = vector.extract_strided_slice %33 {offsets = [0, 16], sizes = [8, 8], strides = [1, 1]} : vector<8x32xbf16> to vector<8x8xbf16>
    %37 = vector.extract_strided_slice %33 {offsets = [0, 24], sizes = [8, 8], strides = [1, 1]} : vector<8x32xbf16> to vector<8x8xbf16>
    %38 = vector.shape_cast %34 : vector<8x8xbf16> to vector<1x8x8xbf16>
    %39 = vector.shape_cast %35 : vector<8x8xbf16> to vector<1x8x8xbf16>
    %40 = vector.shape_cast %36 : vector<8x8xbf16> to vector<1x8x8xbf16>
    %41 = vector.shape_cast %37 : vector<8x8xbf16> to vector<1x8x8xbf16>
    %42 = tpu.concatenate %38, %39, %40, %41 in 0 : vector<1x8x8xbf16>, vector<1x8x8xbf16>, vector<1x8x8xbf16>, vector<1x8x8xbf16> -> vector<4x8x8xbf16>
    "tpu.trace_start"() <{level = 10 : i32, message = "hqd,hkd->hqk"}> : () -> ()
    %cst_8 = arith.constant dense<0.000000e+00> : vector<4x8x8xf32>
    %43 = tpu.matmul %22, %32, %cst_8 {dimension_numbers = #tpu.dot_dimension_numbers<[2], [2], [1], [1], [0, 0, 0, 1, 1, 1], [0], [0]>} : vector<4x8x8xbf16>, vector<4x8x8xbf16>, vector<4x8x8xf32> -> vector<4x8x8xf32>
    "tpu.trace_stop"() : () -> ()
    %cst_9 = arith.constant dense<0xFF800000> : vector<4x8xf32>
    %44 = vector.multi_reduction <maximumf>, %43, %cst_9 [2] : vector<4x8x8xf32> to vector<4x8xf32>
    %45 = vector.shape_cast %44 : vector<4x8xf32> to vector<4x8x1xf32>
    %46 = vector.broadcast %45 : vector<4x8x1xf32> to vector<4x8x8xf32>
    %47 = arith.subf %43, %46 : vector<4x8x8xf32>
    %48 = math.exp %47 : vector<4x8x8xf32>
    %cst_10 = arith.constant dense<0.000000e+00> : vector<4x8xf32>
    %49 = vector.multi_reduction <add>, %48, %cst_10 [2] : vector<4x8x8xf32> to vector<4x8xf32>
    %50 = vector.shape_cast %49 : vector<4x8xf32> to vector<4x8x1xf32>
    %51 = tpu.reciprocal %50 {approx = true} : vector<4x8x1xf32> -> vector<4x8x1xf32>
    %52 = vector.broadcast %51 : vector<4x8x1xf32> to vector<4x8x8xf32>
    %53 = arith.mulf %48, %52 : vector<4x8x8xf32>
    %54 = arith.truncf %53 : vector<4x8x8xf32> to vector<4x8x8xbf16>
    "tpu.trace_start"() <{level = 10 : i32, message = "hqk,hkd->hqd"}> : () -> ()
    %cst_11 = arith.constant dense<0.000000e+00> : vector<4x8x8xf32>
    %55 = tpu.matmul %54, %42, %cst_11 {dimension_numbers = #tpu.dot_dimension_numbers<[2], [1], [1], [2], [0, 0, 0, 1, 1, 2], [0], [0]>} : vector<4x8x8xbf16>, vector<4x8x8xbf16>, vector<4x8x8xf32> -> vector<4x8x8xf32>
    "tpu.trace_stop"() : () -> ()
    %56 = vector.extract_strided_slice %55 {offsets = [0, 0, 0], sizes = [1, 8, 8], strides = [1, 1, 1]} : vector<4x8x8xf32> to vector<1x8x8xf32>
    %57 = vector.shape_cast %56 : vector<1x8x8xf32> to vector<8x8xf32>
    %58 = vector.extract_strided_slice %55 {offsets = [1, 0, 0], sizes = [1, 8, 8], strides = [1, 1, 1]} : vector<4x8x8xf32> to vector<1x8x8xf32>
    %59 = vector.shape_cast %58 : vector<1x8x8xf32> to vector<8x8xf32>
    %60 = vector.extract_strided_slice %55 {offsets = [2, 0, 0], sizes = [1, 8, 8], strides = [1, 1, 1]} : vector<4x8x8xf32> to vector<1x8x8xf32>
    %61 = vector.shape_cast %60 : vector<1x8x8xf32> to vector<8x8xf32>
    %62 = vector.extract_strided_slice %55 {offsets = [3, 0, 0], sizes = [1, 8, 8], strides = [1, 1, 1]} : vector<4x8x8xf32> to vector<1x8x8xf32>
    %63 = vector.shape_cast %62 : vector<1x8x8xf32> to vector<8x8xf32>
    %64 = tpu.concatenate %57, %59, %61, %63 in 1 : vector<8x8xf32>, vector<8x8xf32>, vector<8x8xf32>, vector<8x8xf32> -> vector<8x32xf32>
    %65 = arith.truncf %64 : vector<8x32xf32> to vector<8x32xbf16>
    %c0_12 = arith.constant 0 : index
    %c0_13 = arith.constant 0 : index
    %c0_14 = arith.constant 0 : index
    %66 = vector.load %arg5[%c0_12, %c0_13, %c0_14] : memref<1x32x32xbf16, #tpu.memory_space<vmem>>, vector<1x32x32xbf16>
    %67 = vector.shape_cast %66 : vector<1x32x32xbf16> to vector<32x32xbf16>
    %cst_15 = arith.constant dense<0.000000e+00> : vector<8x32xf32>
    %68 = tpu.matmul %65, %67, %cst_15 {dimension_numbers = #tpu.dot_dimension_numbers<[1], [0], [0], [1], [0, 0, 1, 1], [], []>} : vector<8x32xbf16>, vector<32x32xbf16>, vector<8x32xf32> -> vector<8x32xf32>
    %c0_16 = arith.constant 0 : index
    %c0_17 = arith.constant 0 : index
    %c0_18 = arith.constant 0 : index
    %69 = vector.load %arg6[%c0_16, %c0_17, %c0_18] : memref<1x1x32xf32, #tpu.memory_space<vmem>>, vector<1x1x32xf32>
    %70 = vector.shape_cast %69 : vector<1x1x32xf32> to vector<1x32xf32>
    %71 = vector.broadcast %70 : vector<1x32xf32> to vector<8x32xf32>
    %72 = arith.addf %68, %71 : vector<8x32xf32>
    %73 = arith.addf %3, %72 : vector<8x32xf32>
    %c0_19 = arith.constant 0 : index
    %c0_20 = arith.constant 0 : index
    %c0_21 = arith.constant 0 : index
    %74 = vector.load %arg7[%c0_19, %c0_20, %c0_21] : memref<1x1x32xf32, #tpu.memory_space<vmem>>, vector<1x1x32xf32>
    %75 = vector.shape_cast %74 : vector<1x1x32xf32> to vector<1x32xf32>
    %c0_22 = arith.constant 0 : index
    %c0_23 = arith.constant 0 : index
    %c0_24 = arith.constant 0 : index
    %76 = vector.load %arg8[%c0_22, %c0_23, %c0_24] : memref<1x1x32xf32, #tpu.memory_space<vmem>>, vector<1x1x32xf32>
    %77 = vector.shape_cast %76 : vector<1x1x32xf32> to vector<1x32xf32>
    %cst_25 = arith.constant dense<0.000000e+00> : vector<8xf32>
    %78 = vector.multi_reduction <add>, %73, %cst_25 [1] : vector<8x32xf32> to vector<8xf32>
    %79 = vector.shape_cast %78 : vector<8xf32> to vector<8x1xf32>
    %cst_26 = arith.constant 3.200000e+01 : f32
    %80 = vector.broadcast %cst_26 : f32 to vector<8x1xf32>
    %81 = arith.divf %79, %80 : vector<8x1xf32>
    %82 = vector.broadcast %81 : vector<8x1xf32> to vector<8x32xf32>
    %83 = arith.subf %73, %82 : vector<8x32xf32>
    %84 = arith.mulf %83, %83 : vector<8x32xf32>
    %cst_27 = arith.constant dense<0.000000e+00> : vector<8xf32>
    %85 = vector.multi_reduction <add>, %84, %cst_27 [1] : vector<8x32xf32> to vector<8xf32>
    %86 = vector.shape_cast %85 : vector<8xf32> to vector<8x1xf32>
    %cst_28 = arith.constant 3.200000e+01 : f32
    %87 = vector.broadcast %cst_28 : f32 to vector<8x1xf32>
    %88 = arith.divf %86, %87 : vector<8x1xf32>
    %89 = vector.broadcast %81 : vector<8x1xf32> to vector<8x32xf32>
    %90 = arith.subf %73, %89 : vector<8x32xf32>
    %cst_29 = arith.constant 9.99999996E-13 : f32
    %91 = vector.broadcast %cst_29 : f32 to vector<8x1xf32>
    %92 = arith.addf %88, %91 : vector<8x1xf32>
    %93 = math.rsqrt %92 : vector<8x1xf32>
    %94 = vector.broadcast %93 : vector<8x1xf32> to vector<8x32xf32>
    %95 = arith.mulf %90, %94 : vector<8x32xf32>
    %96 = vector.broadcast %75 : vector<1x32xf32> to vector<8x32xf32>
    %97 = arith.mulf %95, %96 : vector<8x32xf32>
    %98 = vector.broadcast %77 : vector<1x32xf32> to vector<8x32xf32>
    %99 = arith.addf %97, %98 : vector<8x32xf32>
    %100 = arith.truncf %99 : vector<8x32xf32> to vector<8x32xbf16>
    %c0_30 = arith.constant 0 : index
    %c0_31 = arith.constant 0 : index
    %c0_32 = arith.constant 0 : index
    %101 = vector.load %arg9[%c0_30, %c0_31, %c0_32] : memref<1x32x64xbf16, #tpu.memory_space<vmem>>, vector<1x32x64xbf16>
    %102 = vector.shape_cast %101 : vector<1x32x64xbf16> to vector<32x64xbf16>
    %cst_33 = arith.constant dense<0.000000e+00> : vector<8x64xf32>
    %103 = tpu.matmul %100, %102, %cst_33 {dimension_numbers = #tpu.dot_dimension_numbers<[1], [0], [0], [1], [0, 0, 1, 1], [], []>} : vector<8x32xbf16>, vector<32x64xbf16>, vector<8x64xf32> -> vector<8x64xf32>
    %c0_34 = arith.constant 0 : index
    %c0_35 = arith.constant 0 : index
    %c0_36 = arith.constant 0 : index
    %104 = vector.load %arg10[%c0_34, %c0_35, %c0_36] : memref<1x1x64xf32, #tpu.memory_space<vmem>>, vector<1x1x64xf32>
    %105 = vector.shape_cast %104 : vector<1x1x64xf32> to vector<1x64xf32>
    %106 = vector.broadcast %105 : vector<1x64xf32> to vector<8x64xf32>
    %107 = arith.addf %103, %106 : vector<8x64xf32>
    %cst_37 = arith.constant 0.000000e+00 : f32
    %108 = vector.broadcast %cst_37 : f32 to vector<8x64xf32>
    %109 = arith.maximumf %107, %108 : vector<8x64xf32>
    %110 = arith.truncf %109 : vector<8x64xf32> to vector<8x64xbf16>
    %c0_38 = arith.constant 0 : index
    %c0_39 = arith.constant 0 : index
    %c0_40 = arith.constant 0 : index
    %111 = vector.load %arg11[%c0_38, %c0_39, %c0_40] : memref<1x64x32xbf16, #tpu.memory_space<vmem>>, vector<1x64x32xbf16>
    %112 = vector.shape_cast %111 : vector<1x64x32xbf16> to vector<64x32xbf16>
    %cst_41 = arith.constant dense<0.000000e+00> : vector<8x32xf32>
    %113 = tpu.matmul %110, %112, %cst_41 {dimension_numbers = #tpu.dot_dimension_numbers<[1], [0], [0], [1], [0, 0, 1, 1], [], []>} : vector<8x64xbf16>, vector<64x32xbf16>, vector<8x32xf32> -> vector<8x32xf32>
    %c0_42 = arith.constant 0 : index
    %c0_43 = arith.constant 0 : index
    %c0_44 = arith.constant 0 : index
    %114 = vector.load %arg12[%c0_42, %c0_43, %c0_44] : memref<1x1x32xf32, #tpu.memory_space<vmem>>, vector<1x1x32xf32>
    %115 = vector.shape_cast %114 : vector<1x1x32xf32> to vector<1x32xf32>
    %116 = vector.broadcast %115 : vector<1x32xf32> to vector<8x32xf32>
    %117 = arith.addf %113, %116 : vector<8x32xf32>
    %118 = arith.addf %99, %117 : vector<8x32xf32>
    %c0_45 = arith.constant 0 : index
    %c0_46 = arith.constant 0 : index
    %c0_47 = arith.constant 0 : index
    %119 = vector.load %arg13[%c0_45, %c0_46, %c0_47] : memref<1x1x32xf32, #tpu.memory_space<vmem>>, vector<1x1x32xf32>
    %120 = vector.shape_cast %119 : vector<1x1x32xf32> to vector<1x32xf32>
    %c0_48 = arith.constant 0 : index
    %c0_49 = arith.constant 0 : index
    %c0_50 = arith.constant 0 : index
    %121 = vector.load %arg14[%c0_48, %c0_49, %c0_50] : memref<1x1x32xf32, #tpu.memory_space<vmem>>, vector<1x1x32xf32>
    %122 = vector.shape_cast %121 : vector<1x1x32xf32> to vector<1x32xf32>
    %cst_51 = arith.constant dense<0.000000e+00> : vector<8xf32>
    %123 = vector.multi_reduction <add>, %118, %cst_51 [1] : vector<8x32xf32> to vector<8xf32>
    %124 = vector.shape_cast %123 : vector<8xf32> to vector<8x1xf32>
    %cst_52 = arith.constant 3.200000e+01 : f32
    %125 = vector.broadcast %cst_52 : f32 to vector<8x1xf32>
    %126 = arith.divf %124, %125 : vector<8x1xf32>
    %127 = vector.broadcast %126 : vector<8x1xf32> to vector<8x32xf32>
    %128 = arith.subf %118, %127 : vector<8x32xf32>
    %129 = arith.mulf %128, %128 : vector<8x32xf32>
    %cst_53 = arith.constant dense<0.000000e+00> : vector<8xf32>
    %130 = vector.multi_reduction <add>, %129, %cst_53 [1] : vector<8x32xf32> to vector<8xf32>
    %131 = vector.shape_cast %130 : vector<8xf32> to vector<8x1xf32>
    %cst_54 = arith.constant 3.200000e+01 : f32
    %132 = vector.broadcast %cst_54 : f32 to vector<8x1xf32>
    %133 = arith.divf %131, %132 : vector<8x1xf32>
    %134 = vector.broadcast %126 : vector<8x1xf32> to vector<8x32xf32>
    %135 = arith.subf %118, %134 : vector<8x32xf32>
    %cst_55 = arith.constant 9.99999996E-13 : f32
    %136 = vector.broadcast %cst_55 : f32 to vector<8x1xf32>
    %137 = arith.addf %133, %136 : vector<8x1xf32>
    %138 = math.rsqrt %137 : vector<8x1xf32>
    %139 = vector.broadcast %138 : vector<8x1xf32> to vector<8x32xf32>
    %140 = arith.mulf %135, %139 : vector<8x32xf32>
    %141 = vector.broadcast %120 : vector<1x32xf32> to vector<8x32xf32>
    %142 = arith.mulf %140, %141 : vector<8x32xf32>
    %143 = vector.broadcast %122 : vector<1x32xf32> to vector<8x32xf32>
    %144 = arith.addf %142, %143 : vector<8x32xf32>
    %c0_56 = arith.constant 0 : index
    %c0_57 = arith.constant 0 : index
    %145 = vector.load %arg18[%c0_56, %c0_57] : memref<8x32xf32, #tpu.memory_space<vmem>>, vector<8x32xf32>
    tpu.vector_store %arg18[%c0_56, %c0_57], %144 {strides = array<i32>} : memref<8x32xf32, #tpu.memory_space<vmem>>, vector<8x32xf32>,
    %c1_i32 = arith.constant 1 : i32
    %146 = arith.cmpi eq, %arg1, %c1_i32 : i32
    %147 = arith.extui %146 : i1 to i32
    %c0_i32_58 = arith.constant 0 : i32
    %148 = arith.cmpi ne, %147, %c0_i32_58 : i32
    scf.if %148 {
      %c0_59 = arith.constant 0 : index
      %c0_60 = arith.constant 0 : index
      %149 = vector.load %arg15[%c0_59, %c0_60] : memref<1x32xf32, #tpu.memory_space<vmem>>, vector<1x32xf32>
      %c0_61 = arith.constant 0 : index
      %c0_62 = arith.constant 0 : index
      %150 = vector.load %arg16[%c0_61, %c0_62] : memref<1x32xf32, #tpu.memory_space<vmem>>, vector<1x32xf32>
      %cst_63 = arith.constant dense<0.000000e+00> : vector<8xf32>
      %151 = vector.multi_reduction <add>, %144, %cst_63 [1] : vector<8x32xf32> to vector<8xf32>
      %152 = vector.shape_cast %151 : vector<8xf32> to vector<8x1xf32>
      %cst_64 = arith.constant 3.200000e+01 : f32
      %153 = vector.broadcast %cst_64 : f32 to vector<8x1xf32>
      %154 = arith.divf %152, %153 : vector<8x1xf32>
      %155 = vector.broadcast %154 : vector<8x1xf32> to vector<8x32xf32>
      %156 = arith.subf %144, %155 : vector<8x32xf32>
      %157 = arith.mulf %156, %156 : vector<8x32xf32>
      %cst_65 = arith.constant dense<0.000000e+00> : vector<8xf32>
      %158 = vector.multi_reduction <add>, %157, %cst_65 [1] : vector<8x32xf32> to vector<8xf32>
      %159 = vector.shape_cast %158 : vector<8xf32> to vector<8x1xf32>
      %cst_66 = arith.constant 3.200000e+01 : f32
      %160 = vector.broadcast %cst_66 : f32 to vector<8x1xf32>
      %161 = arith.divf %159, %160 : vector<8x1xf32>
      %162 = vector.broadcast %154 : vector<8x1xf32> to vector<8x32xf32>
      %163 = arith.subf %144, %162 : vector<8x32xf32>
      %cst_67 = arith.constant 9.99999996E-13 : f32
      %164 = vector.broadcast %cst_67 : f32 to vector<8x1xf32>
      %165 = arith.addf %161, %164 : vector<8x1xf32>
      %166 = math.rsqrt %165 : vector<8x1xf32>
      %167 = vector.broadcast %166 : vector<8x1xf32> to vector<8x32xf32>
      %168 = arith.mulf %163, %167 : vector<8x32xf32>
      %169 = vector.broadcast %149 : vector<1x32xf32> to vector<8x32xf32>
      %170 = arith.mulf %168, %169 : vector<8x32xf32>
      %171 = vector.broadcast %150 : vector<1x32xf32> to vector<8x32xf32>
      %172 = arith.addf %170, %171 : vector<8x32xf32>
      %c0_68 = arith.constant 0 : index
      %c0_69 = arith.constant 0 : index
      %c0_70 = arith.constant 0 : index
      %173 = vector.load %arg17[%c0_68, %c0_69, %c0_70] : memref<1x8x32xf32, #tpu.memory_space<vmem>>, vector<1x8x32xf32>
      %174 = vector.shape_cast %173 : vector<1x8x32xf32> to vector<8x32xf32>
      %175 = vector.shape_cast %172 : vector<8x32xf32> to vector<1x8x32xf32>
      tpu.vector_store %arg17[%c0_68, %c0_69, %c0_70], %175 {strides = array<i32>} : memref<1x8x32xf32, #tpu.memory_space<vmem>>, vector<1x8x32xf32>,
    } else {
    }
    return
  }
  func.func @transform_0(%arg0: i32, %arg1: i32) -> (i32, i32, i32) {
    %c0_i32 = arith.constant 0 : i32
    %c0_i32_0 = arith.constant 0 : i32
    %c0_i32_1 = arith.constant 0 : i32
    return %arg0, %c0_i32, %c0_i32_0 : i32, i32, i32
  }
  func.func @transform_1(%arg0: i32, %arg1: i32) -> (i32, i32, i32) {
    %c0_i32 = arith.constant 0 : i32
    %c0_i32_0 = arith.constant 0 : i32
    %c0_i32_1 = arith.constant 0 : i32
    return %arg1, %c0_i32, %c0_i32_0 : i32, i32, i32
  }
  func.func @transform_2(%arg0: i32, %arg1: i32) -> (i32, i32, i32) {
    %c0_i32 = arith.constant 0 : i32
    %c0_i32_0 = arith.constant 0 : i32
    %c0_i32_1 = arith.constant 0 : i32
    return %arg1, %c0_i32, %c0_i32_0 : i32, i32, i32
  }
  func.func @transform_3(%arg0: i32, %arg1: i32) -> (i32, i32, i32) {
    %c0_i32 = arith.constant 0 : i32
    %c0_i32_0 = arith.constant 0 : i32
    %c0_i32_1 = arith.constant 0 : i32
    return %arg1, %c0_i32, %c0_i32_0 : i32, i32, i32
  }
  func.func @transform_4(%arg0: i32, %arg1: i32) -> (i32, i32, i32) {
    %c0_i32 = arith.constant 0 : i32
    %c0_i32_0 = arith.constant 0 : i32
    %c0_i32_1 = arith.constant 0 : i32
    return %arg1, %c0_i32, %c0_i32_0 : i32, i32, i32
  }
  func.func @transform_5(%arg0: i32, %arg1: i32) -> (i32, i32, i32) {
    %c0_i32 = arith.constant 0 : i32
    %c0_i32_0 = arith.constant 0 : i32
    %c0_i32_1 = arith.constant 0 : i32
    return %arg1, %c0_i32, %c0_i32_0 : i32, i32, i32
  }
  func.func @transform_6(%arg0: i32, %arg1: i32) -> (i32, i32, i32) {
    %c0_i32 = arith.constant 0 : i32
    %c0_i32_0 = arith.constant 0 : i32
    %c0_i32_1 = arith.constant 0 : i32
    return %arg1, %c0_i32, %c0_i32_0 : i32, i32, i32
  }
  func.func @transform_7(%arg0: i32, %arg1: i32) -> (i32, i32, i32) {
    %c0_i32 = arith.constant 0 : i32
    %c0_i32_0 = arith.constant 0 : i32
    %c0_i32_1 = arith.constant 0 : i32
    return %arg1, %c0_i32, %c0_i32_0 : i32, i32, i32
  }
  func.func @transform_8(%arg0: i32, %arg1: i32) -> (i32, i32, i32) {
    %c0_i32 = arith.constant 0 : i32
    %c0_i32_0 = arith.constant 0 : i32
    %c0_i32_1 = arith.constant 0 : i32
    return %arg1, %c0_i32, %c0_i32_0 : i32, i32, i32
  }
  func.func @transform_9(%arg0: i32, %arg1: i32) -> (i32, i32, i32) {
    %c0_i32 = arith.constant 0 : i32
    %c0_i32_0 = arith.constant 0 : i32
    %c0_i32_1 = arith.constant 0 : i32
    return %arg1, %c0_i32, %c0_i32_0 : i32, i32, i32
  }
  func.func @transform_10(%arg0: i32, %arg1: i32) -> (i32, i32, i32) {
    %c0_i32 = arith.constant 0 : i32
    %c0_i32_0 = arith.constant 0 : i32
    %c0_i32_1 = arith.constant 0 : i32
    return %arg1, %c0_i32, %c0_i32_0 : i32, i32, i32
  }
  func.func @transform_11(%arg0: i32, %arg1: i32) -> (i32, i32, i32) {
    %c0_i32 = arith.constant 0 : i32
    %c0_i32_0 = arith.constant 0 : i32
    %c0_i32_1 = arith.constant 0 : i32
    return %arg1, %c0_i32, %c0_i32_0 : i32, i32, i32
  }
  func.func @transform_12(%arg0: i32, %arg1: i32) -> (i32, i32, i32) {
    %c0_i32 = arith.constant 0 : i32
    %c0_i32_0 = arith.constant 0 : i32
    %c0_i32_1 = arith.constant 0 : i32
    return %arg1, %c0_i32, %c0_i32_0 : i32, i32, i32
  }
  func.func @transform_13(%arg0: i32, %arg1: i32) -> (i32, i32) {
    %c0_i32 = arith.constant 0 : i32
    %c0_i32_0 = arith.constant 0 : i32
    %c0_i32_1 = arith.constant 0 : i32
    return %c0_i32, %c0_i32_0 : i32, i32
  }
  func.func @transform_14(%arg0: i32, %arg1: i32) -> (i32, i32) {
    %c0_i32 = arith.constant 0 : i32
    %c0_i32_0 = arith.constant 0 : i32
    %c0_i32_1 = arith.constant 0 : i32
    return %c0_i32, %c0_i32_0 : i32, i32
  }
  func.func @transform_15(%arg0: i32, %arg1: i32) -> (i32, i32, i32) {
    %c0_i32 = arith.constant 0 : i32
    %c0_i32_0 = arith.constant 0 : i32
    %c0_i32_1 = arith.constant 0 : i32
    return %arg0, %c0_i32, %c0_i32_0 : i32, i32, i32
  }
}

</mosaic_0001>

<bundles_post_ra>
// kernel: tpu_custom_call.1
= control target key start
LH: loop header
LB: loop body
LE: loop exit
PB: predicated region body
PF: predicated region fallthrough
CT: control target
= control target key end

     0   :  { %s3208_s0 = inlined_call_operand.hbm [shape: f32[2,8,32], index: 0, kind: input, shape index: {}]   ;;  %s3209_s1 = inlined_call_operand.vmem [shape: bf16[2,32,96], index: 1, kind: input, shape index: {}]   ;;  %s3210_s2 = inlined_call_operand.vmem [shape: f32[2,1,96], index: 2, kind: input, shape index: {}]   ;;  %s3211_s3 = inlined_call_operand.vmem [shape: bf16[2,32,32], index: 3, kind: input, shape index: {}]   ;;  %s3212_s4 = inlined_call_operand.hbm [shape: f32[2,1,32], index: 4, kind: input, shape index: {}]   ;;  %s3213_s5 = inlined_call_operand.hbm [shape: f32[2,1,32], index: 5, kind: input, shape index: {}]   ;;  %s3214_s6 = inlined_call_operand.hbm [shape: f32[2,1,32], index: 6, kind: input, shape index: {}]   ;;  %s3215_s7 = inlined_call_operand.vmem [shape: bf16[2,32,64], index: 7, kind: input, shape index: {}]   ;;  %s3216_s8 = inlined_call_operand.hbm [shape: f32[2,1,64], index: 8, kind: input, shape index: {}]   ;;  %s3217_s9 = inlined_call_operand.vmem [shape: bf16[2,64,32], index: 9, kind: input, shape index: {}]   ;;  %s3218_s10 = inlined_call_operand.vmem [shape: f32[2,1,32], index: 10, kind: input, shape index: {}]   ;;  %s3219_s11 = inlined_call_operand.vmem [shape: f32[2,1,32], index: 11, kind: input, shape index: {}]   ;;  %s3220_s12 = inlined_call_operand.vmem [shape: f32[2,1,32], index: 12, kind: input, shape index: {}]   ;;  %s3221_s13 = inlined_call_operand.vmem [shape: f32[1,32], index: 13, kind: input, shape index: {}]   ;;  %s3222_s14 = inlined_call_operand.vmem [shape: f32[1,32], index: 14, kind: input, shape index: {}]   ;;  %s3223_s15 = inlined_call_operand.hbm [shape: f32[2,8,32], index: 15, kind: output, shape index: {}]  }
   0x1   :  { %3247 = sst [smem:[#allocation32_spill]] %s3208_s0 }
   0x2   :  { %3248 = sst [smem:[#allocation33_spill]] %s3209_s1 }
   0x3   :  { %3249 = sst [smem:[#allocation34_spill]] %s3210_s2 }
   0x4   :  { %3250 = sst [smem:[#allocation35_spill]] %s3211_s3 }
   0x5   :  { %3251 = sst [smem:[#allocation36_spill]] %s3212_s4 }
   0x6   :  { %3252 = sst [smem:[#allocation37_spill]] %s3213_s5 }
   0x7   :  { %3253 = sst [smem:[#allocation38_spill]] %s3214_s6 }
   0x8   :  { %3254 = sst [smem:[#allocation39_spill]] %s3215_s7 }
   0x9   :  { %3255 = sst [smem:[#allocation40_spill]] %s3216_s8 }
   0xa   :  { %3256 = sst [smem:[#allocation41_spill]] %s3217_s9 }
   0xb   :  { %3257 = sst [smem:[#allocation42_spill]] %s3218_s10 }
   0xc   :  { %3258 = sst [smem:[#allocation43_spill]] %s3219_s11 }
   0xd   :  { %3259 = sst [smem:[#allocation44_spill]] %s3220_s12 }
   0xe   :  { %3260 = sst [smem:[#allocation45_spill]] %s3221_s13 }
   0xf   :  { %3261 = sst [smem:[#allocation46_spill]] %s3222_s14 }
  0x10   :  { %3262 = sst [smem:[#allocation47_spill]] %s3223_s15 }
  0x11   :  { %20 = vsyncpa [#allocation4], 0 }
  0x12   :  { %22 = vsyncpa [#allocation4 + $0x1], 0 }
  0x13   :  { %23 = vsyncpa [#allocation7], 0 }
  0x14   :  { %25 = vsyncpa [#allocation7 + $0x1], 0 }
  0x15   :  { %26 = vsyncpa [#allocation10], 0 }
  0x16   :  { %28 = vsyncpa [#allocation10 + $0x1], 0 }
  0x17   :  { %29 = vsyncpa [#allocation5], 0 }
  0x18   :  { %31 = vsyncpa [#allocation5 + $0x1], 0  ;;  %s2611_s18 = smov 0   ;;  %s2613_s19 = smov 0  }
  0x19   :  { %s2615_s20 = smov 0   ;;  %s2617_s21 = smov 0  }
  0x1a   :  { %s2619_s22 = smov 0   ;;  %s2621_s23 = smov 0  }
  0x1b   :  { %s2623_s24 = smov 0   ;;  %s2625_s25 = smov 0  }
  0x1c   :  { %s2627_s26 = smov 0   ;;  %s2629_s27 = smov 0  }
  0x1d   :  { %s2631_s28 = smov 0  }
  0x1e LB: > { %3263 = sst [smem:[#allocation17_spill]] %s2477_s19  ;;  %s46_s29 = sadd.s32 1, %s2505_s26  ;;  %s2513_s28 = sphi %s2631_s28, %s37_s28   ;;  %s2509_s27 = sphi %s2629_s27, %s3342_s27   ;;  %s2505_s26 = sphi %s2627_s26, %s3341_s26   ;;  %s2501_s25 = sphi %s2625_s25, %s3340_s25   ;;  %s2497_s24 = sphi %s2623_s24, %s3339_s24   ;;  %s2493_s23 = sphi %s2621_s23, %s3338_s23   ;;  %s2489_s22 = sphi %s2619_s22, %s3337_s22   ;;  %s2485_s21 = sphi %s2617_s21, %s3336_s21   ;;  %s2481_s20 = sphi %s2615_s20, %s3335_s20   ;;  %s2477_s19 = sphi %s2613_s19, %s3334_s19   ;;  %s2473_s18 = sphi %s2611_s18, %s3333_s18  }
  0x1f   : > { %3264 = sst [smem:[#allocation18_spill]] %s2481_s20  ;;  %p3229_p0 = scmp.eq.s32.totalorder %s2513_s28, 0 }
  0x20   : > { %3265 = sst [smem:[#allocation19_spill]] %s2485_s21  ;;  %p2668_p1 = scmp.ge.s32.totalorder %s46_s29, 2 }
  0x21   : > { %3266 = sst [smem:[#allocation20_spill]] %s2489_s22  ;;  %s160_s16 = sadd.s32 1, %s2481_s20 }
  0x22   : > { %3267 = sst [smem:[#allocation21_spill]] %s2493_s23  ;;  %p167_p2 = scmp.ne.s32.totalorder %s2481_s20, %s2477_s19 }
  0x23   : > { %3268 = sst [smem:[#allocation22_spill]] %s2497_s24  ;;  %s3344_s29 = smov (%p2668_p1, %s46_s29), 0 }
  0x24   : > { %3269 = sst [smem:[#allocation23_spill]] %s2501_s25  ;;  %p169_p4 = por %p167_p2, %p3229_p0 }
  0x25   : > { %3270 = sst [smem:[#allocation24_spill]] %s2505_s26  ;;  %s157_s17 = ssub.s32 %s2505_s26, %s3344_s29 }
  0x26   : > { %3271 = sst [smem:[#allocation25_spill]] %s2509_s27  ;;  %p3228_p5 = scmp.lt.s32.totalorder %s2513_s28, 4 }
  0x27   : > { %s3272_s30 = scalar_select %p2668_p1, 1, 0 }
  0x28   : > { %3273 = sst [smem:[#allocation26_spill]] %s3344_s29  ;;  %p158_p6 = scmp.eq.s32.totalorder %s157_s17, 0 }
  0x29   : > { %s3230_s15 = sand.u32 1, %s2513_s28   ;;  %s2688_s25 = sand.u32 1, %s2481_s20  }
  0x2a   : > { %s2691_s14 = scalar_select %p158_p6, %s2481_s20, %s160_s16  }
  0x2b   : > { %s2694_s13 = sshll.u32 %s2505_s26, 4  ;;  %s3275_s4 = sld [smem:[#allocation36_spill]] }
  0x2c   : > { %3274 = sst [smem:[#allocation27_spill]] %s2691_s14  ;;  %s522_s29 = scalar_lea.vmem [#allocation6], %s2688_s25 }
  0x2d   : > { %s529_s17 = sshll.u32 %s522_s29, 4  ;;  %p2707_p7 = pnand %p3228_p5, %p169_p4  ;;  %s2703_s17 = int_to_ptr.vmem [resolvable:$true] %s529_s17 }
  0x2e   : > { %s2715_s11 = scalar_lea.sflag [#allocation7], %s3230_s15 }
  0x2f   : > { %s3276_s16 = scalar_select %p2707_p7, 1, 0 }
  0x30   : > { %p2721_p11 = pneg %p2707_p7 }
  0x31   : > { %s2700_s10 = scalar_lea.hbm %s3275_s4, %s2694_s13  ;;  %s2238_s20 = scalar_lea.hbm %s3275_s4, 32 }
  0x32   : > { %s2233_s12 = scalar_lea.hbm %s2700_s10, 16  ;;  %p2239_p2 = scmp.lt.u32.totalorder %s2700_s10, %s3275_s4 }
  0x33   : > { %p2234_p10 = scmp.ne.s32.totalorder %s2700_s10, %s2233_s12  ;;  %p2240_p4 = scmp.lt.u32.totalorder %s2238_s20, %s2233_s12 }
  0x34   : > { %p2242_p5 = scmp.lt.u32.totalorder %s2233_s12, %s2700_s10 }
  0x35   : > { %p2236_p12 = pnand %p2721_p11, %p2234_p10  ;;  %p2241_p6 = por %p2240_p4, %p2239_p2 }
  0x37   : > { %p2237_p13 = pneg %p2236_p12  ;;  %p2243_p3 = por %p2242_p5, %p2241_p6 }
  0x39   : > { %p2244_p0 = pnand %p2243_p3, %p2237_p13 }
  0x3b   : > { %2247 = shalt.err (!%p2244_p0)
}
  0x3c   : > { %s2248_s15 = scalar_lea.vmem %s2703_s17, 16  ;;  %s2515_s14 = smov [#allocation6]  }
  0x3d   : > { %p2249_p10 = scmp.ne.s32.totalorder %s2703_s17, %s2248_s15  ;;  %s2253_s29 = sshll.u32 %s2515_s14, 4  ;;  %s2254_s29 = int_to_ptr.vmem [resolvable:$false] %s2253_s29 }
  0x3e   : > { %s2255_s7 = scalar_lea.vmem %s2254_s29, 32  ;;  %p2256_p9 = scmp.lt.s32.totalorder %s2703_s17, %s2254_s29 }
  0x3f   : > { %p2251_p12 = pnand %p2249_p10, %p2721_p11  ;;  %p2257_p1 = scmp.lt.s32.totalorder %s2255_s7, %s2248_s15 }
  0x41   : > { %p2252_p8 = pneg %p2251_p12  ;;  %p2258_p2 = por %p2257_p1, %p2256_p9 }
  0x43   : > { %p2259_p4 = pnand %p2258_p2, %p2252_p8 }
  0x45   : > { %2262 = shalt.err (!%p2259_p4)
}
  0x46   : > { %2087 = dma.hbm_to_vmem [thread:$0]  (!%p2707_p7), %s2700_s10, 16, %s2703_s17, %s2715_s11  }
  0x47   : > { %p3278_p0 = scmp.lt.s32.totalorder %s2513_s28, 5  ;;  %p3279_p3 = scmp.ge.s32.totalorder %s2513_s28, 1 }
  0x48   : > { %s3281_s6 = sld [smem:[#allocation38_spill]]  ;;  %s556_s14 = scalar_lea.vmem [#allocation9], %s2688_s25 }
  0x49   : > { %p2749_p5 = pnand %p3279_p3, %p3278_p0  ;;  %s563_s29 = sshll.u32 %s556_s14, 4  ;;  %s564_s29 = int_to_ptr.vmem [resolvable:$true] %s563_s29 }
  0x4a   : > { %s3282_s7 = sand.u32 1, %s2513_s28  }
  0x4b   : > { %s3280_s9 = scalar_select %p2749_p5, 1, 0 }
  0x4c   : > { %s2762_s10 = scalar_lea.sflag [#allocation10], %s3282_s7 }
  0x4e   : > { %s2757_s12 = scalar_lea.hbm %s3281_s6, %s2694_s13  ;;  %s2268_s15 = scalar_lea.hbm %s3281_s6, 32 }
  0x4f   : > { %s2263_s17 = scalar_lea.hbm %s2757_s12, 16  ;;  %p2269_p13 = scmp.lt.u32.totalorder %s2757_s12, %s3281_s6 }
  0x50   : > { %p2264_p1 = scmp.ne.s32.totalorder %s2757_s12, %s2263_s17  ;;  %p2270_p6 = scmp.lt.u32.totalorder %s2268_s15, %s2263_s17 }
  0x51   : > { %p2272_p12 = scmp.lt.u32.totalorder %s2263_s17, %s2757_s12 }
  0x52   : > { %p2266_p8 = pnand %p2264_p1, %p2721_p11  ;;  %p2271_p10 = por %p2270_p6, %p2269_p13 }
  0x54   : > { %p2267_p9 = pneg %p2266_p8  ;;  %p2273_p2 = por %p2272_p12, %p2271_p10 }
  0x56   : > { %p2274_p4 = pnand %p2273_p2, %p2267_p9 }
  0x58   : > { %2277 = shalt.err (!%p2274_p4)
}
  0x59   : > { %s2278_s14 = scalar_lea.vmem %s564_s29, 16  ;;  %s2516_s7 = smov [#allocation9]  }
  0x5a   : > { %p2279_p0 = scmp.ne.s32.totalorder %s564_s29, %s2278_s14  ;;  %s2283_s2 = sshll.u32 %s2516_s7, 4  ;;  %s2284_s2 = int_to_ptr.vmem [resolvable:$false] %s2283_s2 }
  0x5b   : > { %s2285_s3 = scalar_lea.vmem %s2284_s2, 32  ;;  %p2286_p8 = scmp.lt.s32.totalorder %s564_s29, %s2284_s2 }
  0x5c   : > { %p2281_p3 = pnand %p2279_p0, %p2721_p11  ;;  %p2287_p5 = scmp.lt.s32.totalorder %s2285_s3, %s2278_s14 }
  0x5e   : > { %p2282_p1 = pneg %p2281_p3  ;;  %p2288_p7 = por %p2287_p5, %p2286_p8 }
  0x60   : > { %p2289_p6 = pnand %p2288_p7, %p2282_p1 }
  0x62   : > { %2292 = shalt.err (!%p2289_p6)
}
  0x63   : > { %p3283_p13 = scmp.ne.s32.totalorder %s3276_s16, 0  ;;  %s2783_s1 = sadd.s32 4294967295, %s2513_s28  }
  0x64   : > { %s1893_s2 = sadd.s32 4294967294, %s2513_s28   ;;  %s49_s4 = sadd.s32 1, %s2509_s27 }
  0x65   : > { %2093 = dma.hbm_to_vmem [thread:$0]  (!%p3283_p13), %s2757_s12, 16, %s564_s29, %s2762_s10  }
  0x66   : > { %p3284_p7 = scmp.ne.s32.totalorder %s3272_s30, 0  ;;  %s56_s17 = sadd.s32 1, %s2493_s23 }
  0x67   : > { %p63_p5 = scmp.ne.s32.totalorder %s2493_s23, %s2489_s22  ;;  %p69_p10 = scmp.ne.s32.totalorder %s2489_s22, %s2485_s21 }
  0x68   : > { %s3346_s4 = smov (!%p3284_p7, %s49_s4), %s2509_s27  ;;  %p3285_p12 = scmp.eq.s32.totalorder %s2513_s28, 0 }
  0x69   : > { %p51_p9 = scmp.ge.s32.totalorder %s3346_s4, 2  ;;  %p70_p4 = scmp.eq.s32.totalorder %s2783_s1, 0 }
  0x6a   : > { %p2797_p2 = por %p3285_p12, %p63_p5  ;;  %p3289_p3 = scmp.ne.s32.totalorder %s2477_s19, %s2473_s18 }
  0x6b   : > { %s3348_s4 = smov (%p51_p9, %s3346_s4), 0  ;;  %p2807_p0 = por %p70_p4, %p69_p10 }
  0x6c   : > { %3287 = sst [smem:[#allocation28_spill]] %s3348_s4  ;;  %p2814_p1 = por %p3289_p3, %p70_p4 }
  0x6d   : > { %s3288_s30 = scalar_select %p2807_p0, 1, 0 }
  0x6e   : > { %s3290_s29 = scalar_select %p2814_p1, 1, 0 }
  0x6f   : > { %s53_s15 = ssub.s32 %s2509_s27, %s3348_s4  ;;  %p447_p8 = scmp.eq.s32.totalorder %s2783_s1, 3 }
  0x70   : > { %3291 = sst [smem:[#allocation29_spill]] %s3290_s29  ;;  %p54_p6 = scmp.eq.s32.totalorder %s53_s15, 0 }
  0x71   : > { %p453_p7 = scmp.eq.s32.totalorder %s1893_s2, 3  ;;  %p2821_p9 = por %p447_p8, %p63_p5 }
  0x72   : > { %s479_s14 = sand.u32 1, %s2493_s23   ;;  %s1897_s6 = sshll.u32 %s2509_s27, 7 }
  0x73   : > { %s3292_s20 = scalar_select %p2821_p9, 1, 0 }
  0x74   : > { %s2827_s7 = scalar_select %p54_p6, %s2493_s23, %s56_s17  }
  0x75   : > { %p2832_p12 = por %p453_p7, %p69_p10  ;;  %s1896_s18 = sshll.u32 %s479_s14, 3 }
  0x76   : > { %3293 = sst [smem:[#allocation30_spill]] %s2827_s7  ;;  %s3296_s0 = sld [smem:[#allocation32_spill]] }
  0x77   : > { %s3294_s3 = scalar_select %p2832_p12, 1, 0 }
  0x78   : > { %s483_s2 = scalar_lea.vmem [#allocation3], %s1896_s18  ;;  %p3297_p5 = scmp.lt.s32.totalorder %s2513_s28, 4 }
  0x79   : > { %3295 = sst [smem:[#allocation31_spill]] %s3294_s3  ;;  %s490_s15 = sshll.u32 %s483_s2, 4  ;;  %s2850_s15 = int_to_ptr.vmem [resolvable:$true] %s490_s15 }
  0x7a   : > { %p2846_p4 = pnand %p3297_p5, %p2797_p2  ;;  %s3299_s5 = sld [smem:[#allocation37_spill]] }
  0x7b   : > { %s480_s29 = scalar_lea.sflag [#allocation4], %s479_s14 }
  0x7c   : > { %s2840_s4 = scalar_lea.hbm %s3296_s0, %s1897_s6  ;;  %p2295_p3 = pneg %p2846_p4 }
  0x7d   : > { %s2293_s7 = scalar_lea.hbm %s2840_s4, 128  ;;  %s2298_s2 = scalar_lea.hbm %s3296_s0, 256 }
  0x7e   : > { %p2294_p10 = scmp.ne.s32.totalorder %s2840_s4, %s2293_s7  ;;  %p2299_p6 = scmp.lt.u32.totalorder %s2840_s4, %s3296_s0 }
  0x7f   : > { %p2300_p7 = scmp.lt.u32.totalorder %s2298_s2, %s2293_s7  ;;  %p2302_p12 = scmp.lt.u32.totalorder %s2293_s7, %s2840_s4 }
  0x80   : > { %s2856_s6 = scalar_lea.hbm %s3299_s5, %s2694_s13  ;;  %p2296_p2 = pnand %p2295_p3, %p2294_p10 }
  0x81   : > { %p2301_p5 = por %p2300_p7, %p2299_p6 }
  0x82   : > { %p2297_p8 = pneg %p2296_p2 }
  0x83   : > { %p2303_p9 = por %p2302_p12, %p2301_p5 }
  0x85   : > { %p2304_p1 = pnand %p2303_p9, %p2297_p8 }
  0x87   : > { %2307 = shalt.err (!%p2304_p1)
}
  0x88   : > { %s2308_s27 = scalar_lea.vmem %s2850_s15, 128  ;;  %s2517_s14 = smov [#allocation3]  }
  0x89   : > { %p2309_p10 = scmp.ne.s32.totalorder %s2850_s15, %s2308_s27  ;;  %s2313_s24 = sshll.u32 %s2517_s14, 4  ;;  %s2314_s24 = int_to_ptr.vmem [resolvable:$false] %s2313_s24 }
  0x8a   : > { %s2315_s23 = scalar_lea.vmem %s2314_s24, 256  ;;  %p2316_p13 = scmp.lt.s32.totalorder %s2850_s15, %s2314_s24 }
  0x8b   : > { %p2311_p2 = pnand %p2309_p10, %p2295_p3  ;;  %p2317_p6 = scmp.lt.s32.totalorder %s2315_s23, %s2308_s27 }
  0x8d   : > { %p2312_p0 = pneg %p2311_p2  ;;  %p2318_p7 = por %p2317_p6, %p2316_p13 }
  0x8f   : > { %p2319_p12 = pnand %p2318_p7, %p2312_p0 }
  0x91   : > { %2322 = shalt.err (!%p2319_p12)
}
  0x92   : > { %2084 = dma.hbm_to_vmem [thread:$0]  (!%p2846_p4), %s2840_s4, 128, %s2850_s15, %s480_s29  }
  0x93   : > { %s539_s7 = scalar_lea.vmem [#allocation8], %s2688_s25  ;;  %s3300_s8 = sld [smem:[#allocation40_spill]] }
  0x94   : > { %s546_s3 = sshll.u32 %s539_s7, 4  ;;  %s2323_s27 = scalar_lea.hbm %s2856_s6, 16  ;;  %s547_s3 = int_to_ptr.vmem [resolvable:$true] %s546_s3 }
  0x95   : > { %p2324_p13 = scmp.ne.s32.totalorder %s2856_s6, %s2323_s27  ;;  %s2328_s24 = scalar_lea.hbm %s3299_s5, 32 }
  0x96   : > { %p2329_p9 = scmp.lt.u32.totalorder %s2856_s6, %s3299_s5  ;;  %p2330_p4 = scmp.lt.u32.totalorder %s2328_s24, %s2323_s27 }
  0x97   : > { %p2326_p0 = pnand %p2324_p13, %p2721_p11  ;;  %p2332_p8 = scmp.lt.u32.totalorder %s2323_s27, %s2856_s6 }
  0x98   : > { %p2331_p3 = por %p2330_p4, %p2329_p9 }
  0x99   : > { %s2888_s2 = scalar_lea.hbm %s3300_s8, %s2694_s13  ;;  %p2327_p1 = pneg %p2326_p0 }
  0x9a   : > { %p2333_p5 = por %p2332_p8, %p2331_p3 }
  0x9c   : > { %p2334_p10 = pnand %p2333_p5, %p2327_p1 }
  0x9e   : > { %2337 = shalt.err (!%p2334_p10)
}
  0x9f   : > { %s2338_s13 = scalar_lea.vmem %s547_s3, 16  ;;  %s2518_s4 = smov [#allocation8]  }
  0xa0   : > { %p2339_p2 = scmp.ne.s32.totalorder %s547_s3, %s2338_s13  ;;  %s2343_s15 = sshll.u32 %s2518_s4, 4  ;;  %s2344_s15 = int_to_ptr.vmem [resolvable:$false] %s2343_s15 }
  0xa1   : > { %s2345_s29 = scalar_lea.vmem %s2344_s15, 32  ;;  %p2346_p12 = scmp.lt.s32.totalorder %s547_s3, %s2344_s15 }
  0xa2   : > { %p2341_p6 = pnand %p2339_p2, %p2721_p11  ;;  %p2347_p13 = scmp.lt.s32.totalorder %s2345_s29, %s2338_s13 }
  0xa4   : > { %p2342_p7 = pneg %p2341_p6  ;;  %p2348_p0 = por %p2347_p13, %p2346_p12 }
  0xa6   : > { %p2349_p4 = pnand %p2348_p0, %p2342_p7 }
  0xa8   : > { %2352 = shalt.err (!%p2349_p4)
}
  0xa9   : > { %p3301_p9 = scmp.ne.s32.totalorder %s3276_s16, 0  ;;  %s581_s0 = scalar_lea.vmem [#allocation11], %s2688_s25 }
  0xaa   : > { %s588_s7 = sshll.u32 %s581_s0, 4  ;;  %s2353_s12 = scalar_lea.hbm %s2888_s2, 16  ;;  %s589_s7 = int_to_ptr.vmem [resolvable:$true] %s588_s7 }
  0xab   : > { %2090 = dma.hbm_to_vmem [thread:$0]  (!%p3301_p9), %s2856_s6, 16, %s547_s3, %s2715_s11  }
  0xac   : > { %p2354_p1 = scmp.ne.s32.totalorder %s2888_s2, %s2353_s12  ;;  %s2358_s17 = scalar_lea.hbm %s3300_s8, 32 }
  0xad   : > { %p2359_p5 = scmp.lt.u32.totalorder %s2888_s2, %s3300_s8  ;;  %p2360_p10 = scmp.lt.u32.totalorder %s2358_s17, %s2353_s12 }
  0xae   : > { %p2356_p3 = pnand %p2354_p1, %p2721_p11  ;;  %p2362_p6 = scmp.lt.u32.totalorder %s2353_s12, %s2888_s2 }
  0xaf   : > { %p2361_p2 = por %p2360_p10, %p2359_p5 }
  0xb0   : > { %p2357_p8 = pneg %p2356_p3 }
  0xb1   : > { %p2363_p7 = por %p2362_p6, %p2361_p2 }
  0xb3   : > { %p2364_p12 = pnand %p2363_p7, %p2357_p8 }
  0xb5   : > { %2367 = shalt.err (!%p2364_p12)
}
  0xb6   : > { %s2368_s25 = scalar_lea.vmem %s589_s7, 16  ;;  %s2519_s11 = smov [#allocation11]  }
  0xb7   : > { %p2369_p13 = scmp.ne.s32.totalorder %s589_s7, %s2368_s25  ;;  %s2373_s6 = sshll.u32 %s2519_s11, 4  ;;  %s2374_s6 = int_to_ptr.vmem [resolvable:$false] %s2373_s6 }
  0xb8   : > { %s2375_s3 = scalar_lea.vmem %s2374_s6, 32  ;;  %p2376_p1 = scmp.lt.s32.totalorder %s589_s7, %s2374_s6 }
  0xb9   : > { %p2371_p0 = pnand %p2369_p13, %p2721_p11  ;;  %p2377_p3 = scmp.lt.s32.totalorder %s2375_s3, %s2368_s25 }
  0xbb   : > { %p2372_p4 = pneg %p2371_p0  ;;  %p2378_p9 = por %p2377_p3, %p2376_p1 }
  0xbd   : > { %p2379_p5 = pnand %p2378_p9, %p2372_p4 }
  0xbf   : > { %2382 = shalt.err (!%p2379_p5)
}
  0xc0   : > { %p3302_p10 = scmp.ne.s32.totalorder %s3276_s16, 0  ;;  %p3303_p8 = scmp.ne.s32.totalorder %s3280_s9, 0 }
  0xc1   : > { %s2930_s26 = sand.u32 (!%p3303_p8), 1, %s2489_s22   ;;  %p3304_p11 = scmp.ne.s32.totalorder (!%p3303_p8), %s3288_s30, 0 }
  0xc2   : > { %2096 = dma.hbm_to_vmem [thread:$0]  (!%p3302_p10), %s2888_s2, 16, %s589_s7, %s2762_s10  }
  0xc3   : > { %623 = sbr.rel (%p3303_p8) target bundleno = 3178 (0xc6a), region = 80  ;;  %s1903_s23 = sshll.u32 (!%p3303_p8), %s2930_s26, 3 }
  0xc4   : > { %s626_s13 = scalar_lea.sflag (!%p3303_p8), [#allocation4], %s2930_s26  ;;  %s629_s4 = scalar_lea.vmem (!%p3303_p8), [#allocation3], %s1903_s23 }
  0xca   : > { %2456 = dma.done.wait (%p3304_p11), %s626_s13, 128  }
  0xcb   : > { %2458 = vsyncadd (%p3304_p11), %s626_s13, 4294967168  ;;  %s3305_s16 = sld [smem:[#allocation29_spill]]  ;;  %s634_s10 = sand.u32 1, %s2783_s1  }
  0xcc   : > { %s2940_s9 = sand.u32 1, %s2477_s19   ;;  %s635_s2 = scalar_lea.sflag [#allocation7], %s634_s10 }
  0xd1   : > { %p3306_p9 = scmp.ne.s32.totalorder %s3305_s16, 0 }
  0xd3   : > { %2460 = dma.done.wait (%p3306_p9), %s635_s2, 32  }
  0xd4   : > { %2462 = vsyncadd (%p3306_p9), %s635_s2, 4294967264  ;;  %s651_s30 = scalar_lea.sflag [#allocation10], %s634_s10 }
  0xd5   : > { %2464 = dma.done.wait (%p3306_p9), %s651_s30, 32  }
  0xd6   : > { %2466 = vsyncadd (%p3306_p9), %s651_s30, 4294967264  ;;  %s3307_s1 = sld [smem:[#allocation22_spill]]  ;;  %s3309_s11 = sld [smem:[#allocation33_spill]] }
  0xd7   : > { %s3310_s16 = sld [smem:[#allocation35_spill]]  ;;  %s3311_s0 = sld [smem:[#allocation39_spill]] }
  0xd8   : > { %s3312_s22 = sld [smem:[#allocation41_spill]]  ;;  %s3313_s24 = sld [smem:[#allocation42_spill]] }
  0xd9   : > { %s3314_s3 = sld [smem:[#allocation43_spill]]  ;;  %s3315_s21 = sld [smem:[#allocation44_spill]] }
  0xdc   : > { %p756_p2 = scmp.lt.s32.totalorder %s3307_s1, 1  ;;  %p1913_p6 = scmp.ne.s32.totalorder %s3307_s1, 0 }
  0xdd   : > { %v793_v0 = vld [vmem:[%s629_s4] sm:$0xff] (!%p1913_p6)  ;;  %vm794_vm0 = vcmask (!%p1913_p6), 261120  }
  0xde   : > { %s2955_s7 = scalar_select %p756_p2, %s3307_s1, 1 }
  0xdf   : > { %792 = sbr.rel (%p1913_p6) target bundleno = 230 (0xe6), region = 104  ;;  %795 = vst.msk [vmem:[#allocation2] sm:$0xff] (!%p1913_p6), %vm794_vm0, %v793_v0 }
  0xe0   : > { %s1951_s12 = sshll.u32 %s2955_s7, 4  ;;  %s1954_s15 = sshll.u32 %s2955_s7, 5 }
  0xe1   : > { %s760_s6 = scalar_lea.vmem %s3309_s11, %s1951_s12  ;;  %s2968_s10 = scalar_lea.vmem %s3310_s16, %s1951_s12 }
  0xe2   : > { %s2973_s29 = scalar_lea.vmem %s3311_s0, %s1951_s12  ;;  %s2979_s18 = scalar_lea.vmem %s3312_s22, %s1954_s15 }
  0xe3   : > { %s781_s25 = scalar_lea.vmem %s3313_s24, %s2955_s7  ;;  %s784_s13 = scalar_lea.vmem %s3314_s3, %s2955_s7 }
  0xe4   : > { %s787_s2 = scalar_lea.vmem %s3315_s21, %s2955_s7  ;;  %s661_s0 = scalar_lea.vmem [#allocation11], %s2940_s9 }
  0xe5   : > { %s2994_s12 = scalar_lea.vmem [#allocation12], %s1903_s23 }
  0xe6 PF: > { %v2201_v1 = vld [vmem:[%s760_s6] sm:$0xff]   ;;  %v2520_v2 = vmov 0.0   ;;  %v2202_v3 = vld [vmem:[%s760_s6 + $0x8] sm:$0xff]   ;;  %vm2521_vm1 = vmmov 0   ;;  %vm821_vm2 = vcmask 261120   ;;  %s3316_s19 = sld [smem:[#allocation34_spill]] }
  0xe7   : > { %1985 = vmatprep.subr.bf16.mxu0 %v2520_v2  ;;  %1993 = vmatprep.subr.bf16.mxu1 %v2520_v2  ;;  %v3001_v4 = vld [vmem:[#allocation2] sm:$0xff]  ;;  %s2522_s22 = smov 104   ;;  %s2523_s23 = smov 120   ;;  %vm875_vm3 = vcmask 64512   ;;  %vm1119_vm4 = vcmask 1043456   ;;  %vm1320_vm5 = vcmask 130048  }
  0xe8   : > { %1986 = vmatpush3.bf16.msra.mxu0 %v2201_v1  ;;  %1989 = vmatprep.mubr.msk.bf16.mxu0 %vm2521_vm1, %v2520_v2  ;;  %v797_v5 = vpack.c.bf16 %v3001_v4, %v3001_v4  ;;  %s2524_s4 = smov 96   ;;  %s2525_s15 = smov 112   ;;  %vm1322_vm6 = vcmask 195584   ;;  %vm1530_vm7 = vcmask 523264  }
  0xe9   : > { %1987 = vmatprep.subr.bf16.mxu0 %v2520_v2  ;;  %1995 = vmatprep.mubr.msk.bf16.mxu1 %vm2521_vm1, %v2520_v2  ;;  %s2526_s1 = smov 64   ;;  %s2527_s14 = smov 8  }
  0xea   : > { %s2528_s6 = smov 16   ;;  %s2529_s30 = smov 24  }
  0xeb   : > { %s3320_s27 = scalar_lea.vmem [#allocation9], %s2940_s9  ;;  %s3324_s5 = sld [smem:[#allocation22_spill]] }
  0xec   : > { %1988 = vmatpush3.bf16.msra.mxu0 %v2202_v3  ;;  %s3317_s21 = scalar_lea.vmem %s3316_s19, %s2955_s7 }
  0xed   : > { %1999 = vmatprep.subr.bf16.mxu0 %v2520_v2  ;;  %v1914_v6 = vld [vmem:[%s3317_s21] ss:$0 sm:$0xff] }
  0xef   : > { %1990 = vmatmul.mubr.msk.bf16.vlgmr.msra.gmra.mrb[0].mxu0 %vm821_vm2, %v797_v5 }
  0xf0   : > { %2001 = vmatprep.mubr.msk.bf16.mxu0 %vm2521_vm1, %v2520_v2 }
  0xf1   : > { %p1944_p7 = scmp.ne.s32.totalorder %s3324_s5, 1 }
  0xf2   : > { %s3326_s21 = sld [smem:[#allocation46_spill]] (!%p1944_p7) }
 0x1c2   : > { %v859_v7 = vpop.f32.mrb[0].mxu0 }
 0x1c3   : > { %v860_v8 = vadd.f32 %v1914_v6, %v859_v7  ;;  %v1991_v9 = vpop.f32.mrb[1].mxu0 }
 0x1c4   : > { %v862_v10 = vpop.f32.mrb[2].mxu0 }
 0x1c5   : > { %v3017_v11 = vpack.c.bf16 %v860_v8, %v860_v8  ;;  %v1992_v12 = vpop.f32.mrb[3].mxu0 }
 0x1c7   : > { %871 = vrot.lane.b32.xlu1 %v3017_v11, %s2522_s22  ;;  %867 = vrot.lane.b32.xlu0 %v3017_v11, %s2523_s23 }
 0x1cb   : > { %873 = vrot.lane.b32.xlu1 %v3017_v11, %s2524_s4  ;;  %869 = vrot.lane.b32.xlu0 %v3017_v11, %s2525_s15 }
 0x239   : > { %v3023_v13 = vpop.permute.xlu1 %871  ;;  %v868_v14 = vpop.permute.xlu0 %867 }
 0x23a   : > { %922 = vrot.lane.b32.xlu0 %v868_v14, %s2524_s4 }
 0x23d   : > { %v874_v15 = vpop.permute.xlu1 %873  ;;  %v3025_v16 = vpop.permute.xlu0 %869 }
 0x23e   : > { %1018 = vrot.lane.b32.xlu0 %v3023_v13, %s2524_s4  ;;  %970 = vrot.lane.b32.xlu1 %v3025_v16, %s2524_s4  ;;  %v880_v17 = vsel %vm875_vm3, %v874_v15, 0 }
 0x23f   : > { %1994 = vmatpush3.bf16.xpose.msra.mxu1 %v880_v17 }
 0x240   : > { %2005 = vmatprep.subr.bf16.mxu1 %v2520_v2 }
 0x246   : > { %1996 = vmatmul.mubr.msk.bf16.vlgmr.msra.gmra.mrb[0].mxu1 %vm875_vm3, %v3017_v11 }
 0x247   : > { %2007 = vmatprep.mubr.msk.bf16.mxu1 %vm2521_vm1, %v2520_v2 }
 0x2ac   : > { %v923_v18 = vpop.permute.xlu0 %922 }
 0x2ad   : > { %v928_v19 = vsel %vm875_vm3, %v923_v18, 0 }
 0x2ae   : > { %2000 = vmatpush3.bf16.xpose.msra.mxu0 %v928_v19 }
 0x2af   : > { %2011 = vmatprep.subr.bf16.mxu0 %v2520_v2 }
 0x2b0   : > { %v971_v20 = vpop.permute.xlu1 %970  ;;  %v1019_v22 = vpop.permute.xlu0 %1018 }
 0x2b1   : > { %v976_v21 = vsel %vm875_vm3, %v971_v20, 0  ;;  %v1024_v23 = vsel %vm875_vm3, %v1019_v22, 0 }
 0x2b2   : > { %2006 = vmatpush3.bf16.xpose.msra.mxu1 %v976_v21 }
 0x2b3   : > { %2017 = vmatprep.subr.bf16.mxu1 %v2520_v2 }
 0x2b5   : > { %2002 = vmatmul.mubr.msk.bf16.vlgmr.msra.gmra.mrb[4].mxu0 %vm875_vm3, %v868_v14 }
 0x2b6   : > { %2012 = vmatpush3.bf16.xpose.msra.mxu0 %v1024_v23  ;;  %2013 = vmatprep.mubr.msk.bf16.mxu0 %vm2521_vm1, %v2520_v2 }
 0x2b7   : > { %2023 = vmatprep.subr.bf16.mxu0 %v2520_v2 }
 0x2b9   : > { %2008 = vmatmul.mubr.msk.bf16.vlgmr.msra.gmra.mrb[4].mxu1 %vm875_vm3, %v3025_v16 }
 0x2ba   : > { %2019 = vmatprep.mubr.msk.bf16.mxu1 %vm2521_vm1, %v2520_v2 }
 0x2bd   : > { %2014 = vmatmul.mubr.msk.bf16.vlgmr.msra.gmra.mrb[8].mxu0 %vm875_vm3, %v3023_v13 }
 0x2be   : > { %2025 = vmatprep.mubr.msk.bf16.mxu0 %vm2521_vm1, %v2520_v2 }
 0x319   : > { %v916_v24 = vpop.f32.mrb[0].mxu1 }
 0x31a   : > { %v1997_v25 = vpop.f32.mrb[1].mxu1  ;;  %v1066_v26 = vsel %vm875_vm3, %v916_v24, -inf }
 0x31b   : > { %v919_v27 = vpop.f32.mrb[2].mxu1  ;;  %1067 = vmax.xlane.f32.xlu1 %v1066_v26 }
 0x31c   : > { %v1998_v28 = vpop.f32.mrb[3].mxu1 }
 0x388   : > { %v964_v29 = vpop.f32.mrb[4].mxu0 }
 0x389   : > { %v2003_v30 = vpop.f32.mrb[5].mxu0  ;;  %v1069_v31 = vsel %vm875_vm3, %v964_v29, -inf }
 0x38a   : > { %1070 = vmax.xlane.f32.xlu0 %v1069_v31  ;;  %v967_v32 = vpop.f32.mrb[6].mxu0  ;;  %v2203_v30 = vld [vmem:[%s2968_s10] sm:$0xff]   ;;  %v2204_v31 = vld [vmem:[%s2968_s10 + $0x8] sm:$0xff]   ;;  %s3318_s10 = scalar_lea.vmem [#allocation6], %s2940_s9 }
 0x38b   : > { %v2004_v33 = vpop.f32.mrb[7].mxu0 }
 0x38c   : > { %v1012_v34 = vpop.f32.mrb[4].mxu1 }
 0x38d   : > { %v2009_v35 = vpop.f32.mrb[5].mxu1  ;;  %v1072_v36 = vsel %vm875_vm3, %v1012_v34, -inf }
 0x38e   : > { %v1015_v37 = vpop.f32.mrb[6].mxu1  ;;  %1073 = vmax.xlane.f32.xlu0 %v1072_v36 }
 0x38f   : > { %v2010_v38 = vpop.f32.mrb[7].mxu1 }
 0x390   : > { %v1060_v39 = vpop.f32.mrb[8].mxu0 }
 0x391   : > { %v2015_v40 = vpop.f32.mrb[9].mxu0  ;;  %v1075_v41 = vsel %vm875_vm3, %v1060_v39, -inf }
 0x392   : > { %1076 = vmax.xlane.f32.xlu1 %v1075_v41  ;;  %v1063_v42 = vpop.f32.mrb[10].mxu0 }
 0x393   : > { %v2016_v43 = vpop.f32.mrb[11].mxu0 }
 0x3a3   : > { %1163 = vrot.lane.b32.xlu1 %v868_v14, %s2526_s1 }
 0x3a4   : > { %1114 = vrot.lane.b32.xlu0 %v3017_v11, %s2526_s1 }
 0x3a8   : > { %v1068_v44 = vpop.xlane.xlu1 %1067 }
 0x3a9   : > { %v1078_v45 = vsub.f32 %v916_v24, %v1068_v44 }
 0x3ab   : > { %v1082_v46 = vmul.f32 1.442695, %v1078_v45 }
 0x3ad   : > { %2211 = vpow2.f32 %v1082_v46 }
 0x3b7   : > { %v2212_v47 = vpop.eup %2211 }
 0x3b8   : > { %v1090_v48 = vsel %vm875_vm3, %v2212_v47, 0.0 }
 0x3c3   : > { %1091 = vadd.xlane.f32.xlu0 %v1090_v48 }
 0x417   : > { %v1071_v49 = vpop.xlane.xlu0 %1070 }
 0x418   : > { %v1079_v50 = vsub.f32 %v964_v29, %v1071_v49 }
 0x41a   : > { %v1084_v51 = vmul.f32 1.442695, %v1079_v50 }
 0x41b   : > { %v1074_v52 = vpop.xlane.xlu0 %1073 }
 0x41c   : > { %2213 = vpow2.f32 %v1084_v51  ;;  %v1080_v53 = vsub.f32 %v1012_v34, %v1074_v52  ;;  %v1926_v51 = vld [vmem:[%s3318_s10] ss:$0 sm:$0xff] }
 0x41e   : > { %v1086_v54 = vmul.f32 1.442695, %v1080_v53 }
 0x41f   : > { %v1115_v55 = vpop.permute.xlu0 %1114  ;;  %v1077_v56 = vpop.xlane.xlu1 %1076 }
 0x420   : > { %2215 = vpow2.f32 %v1086_v54  ;;  %v1121_v57 = vsel %vm1119_vm4, %v1115_v55, 0  ;;  %v1081_v58 = vsub.f32 %v1060_v39, %v1077_v56 }
 0x421   : > { %2018 = vmatpush3.bf16.msra.mxu1 %v1121_v57 }
 0x422   : > { %v1088_v59 = vmul.f32 1.442695, %v1081_v58  ;;  %2029 = vmatprep.subr.bf16.mxu1 %v2520_v2 }
 0x423   : > { %v1164_v60 = vpop.permute.xlu1 %1163 }
 0x424   : > { %2217 = vpow2.f32 %v1088_v59  ;;  %v1169_v61 = vsel %vm1119_vm4, %v1164_v60, 0 }
 0x425   : > { %2024 = vmatpush3.bf16.msra.mxu0 %v1169_v61 }
 0x426   : > { %v2214_v62 = vpop.eup %2213  ;;  %2035 = vmatprep.subr.bf16.mxu0 %v2520_v2 }
 0x427   : > { %v1093_v63 = vsel %vm875_vm3, %v2214_v62, 0.0 }
 0x428   : > { %1094 = vadd.xlane.f32.xlu1 %v1093_v63 }
 0x42a   : > { %v2216_v0 = vpop.eup %2215 }
 0x42b   : > { %v1096_v1 = vsel %vm875_vm3, %v2216_v0, 0.0 }
 0x42c   : > { %1097 = vadd.xlane.f32.xlu0 %v1096_v1  ;;  %v2206_v1 = vld [vmem:[%s2973_s29 + $0x8] sm:$0xff]  }
 0x42e   : > { %v2218_v3 = vpop.eup %2217 }
 0x42f   : > { %v1099_v5 = vsel %vm875_vm3, %v2218_v3, 0.0 }
 0x430   : > { %1100 = vadd.xlane.f32.xlu1 %v1099_v5 }
 0x441   : > { %1211 = vrot.lane.b32.xlu1 %v3025_v16, %s2526_s1 }
 0x442   : > { %1259 = vrot.lane.b32.xlu0 %v3023_v13, %s2526_s1 }
 0x450   : > { %v1092_v6 = vpop.xlane.xlu0 %1091 }
 0x451   : > { %2219 = vrcp.f32 %v1092_v6 }
 0x45b   : > { %v2220_v7 = vpop.eup %2219 }
 0x45c   : > { %v1106_v8 = vmul.f32 %v2220_v7, %v2212_v47 }
 0x45e   : > { %v1110_v9 = vpack.c.bf16 %v1106_v8, %v1106_v8 }
 0x460   : > { %2020 = vmatmul.mubr.msk.bf16.vlgmr.msra.gmra.mrb[8].mxu1 %vm875_vm3, %v1110_v9 }
 0x461   : > { %2031 = vmatprep.mubr.msk.bf16.mxu1 %vm2521_vm1, %v2520_v2 }
 0x4b5   : > { %v1095_v10 = vpop.xlane.xlu1 %1094 }
 0x4b6   : > { %2221 = vrcp.f32 %v1095_v10 }
 0x4b9   : > { %v1098_v11 = vpop.xlane.xlu0 %1097 }
 0x4ba   : > { %2223 = vrcp.f32 %v1098_v11  ;;  %v1931_v11 = vld [vmem:[%s3320_s27] ss:$0 sm:$0xff] }
 0x4bd   : > { %v1101_v12 = vpop.xlane.xlu1 %1100  ;;  %v1260_v13 = vpop.permute.xlu0 %1259 }
 0x4be   : > { %2225 = vrcp.f32 %v1101_v12  ;;  %v1265_v21 = vsel %vm1119_vm4, %v1260_v13, 0  ;;  %v2210_v13 = vld [vmem:[%s2979_s18 + $0x18] sm:$0xff]  }
 0x4c0   : > { %v2222_v14 = vpop.eup %2221 }
 0x4c1   : > { %v1107_v15 = vmul.f32 %v2222_v14, %v2214_v62  ;;  %v1212_v16 = vpop.permute.xlu1 %1211 }
 0x4c2   : > { %v1217_v17 = vsel %vm1119_vm4, %v1212_v16, 0  ;;  %v2209_v16 = vld [vmem:[%s2979_s18 + $0x10] sm:$0xff]  }
 0x4c3   : > { %2030 = vmatpush3.bf16.msra.mxu1 %v1217_v17  ;;  %v1111_v18 = vpack.c.bf16 %v1107_v15, %v1107_v15  ;;  %v1932_v17 = vld [vmem:[%s661_s0] ss:$0 sm:$0xff] }
 0x4c4   : > { %v2224_v19 = vpop.eup %2223  ;;  %2041 = vmatprep.subr.bf16.mxu1 %v2520_v2 }
 0x4c5   : > { %v1108_v20 = vmul.f32 %v2224_v19, %v2216_v0  ;;  %2026 = vmatmul.mubr.msk.bf16.vlgmr.msra.gmra.mrb[12].mxu0 %vm875_vm3, %v1111_v18  ;;  %v2205_v0 = vld [vmem:[%s2973_s29] sm:$0xff]   ;;  %s3319_s29 = scalar_lea.vmem [#allocation8], %s2940_s9 }
 0x4c6   : > { %2036 = vmatpush3.bf16.msra.mxu0 %v1265_v21  ;;  %2037 = vmatprep.mubr.msk.bf16.mxu0 %vm2521_vm1, %v2520_v2  ;;  %v1930_v9 = vld [vmem:[%s3319_s29] ss:$0 sm:$0xff] }
 0x4c7   : > { %v1112_v22 = vpack.c.bf16 %v1108_v20, %v1108_v20  ;;  %2049 = vmatprep.subr.bf16.mxu0 %v2520_v2 }
 0x4c8   : > { %v2226_v23 = vpop.eup %2225 }
 0x4c9   : > { %v1109_v24 = vmul.f32 %v2226_v23, %v2218_v3  ;;  %2032 = vmatmul.mubr.msk.bf16.vlgmr.msra.gmra.mrb[12].mxu1 %vm875_vm3, %v1112_v22  ;;  %v2208_v3 = vld [vmem:[%s2979_s18 + $0x8] sm:$0xff]  }
 0x4ca   : > { %2045 = vmatprep.mubr.msk.bf16.mxu1 %vm2521_vm1, %v2520_v2  ;;  %2042 = vmatpush3.bf16.msra.mxu1 %v2203_v30 }
 0x4cb   : > { %v1113_v25 = vpack.c.bf16 %v1109_v24, %v1109_v24  ;;  %2043 = vmatprep.subr.bf16.mxu1 %v2520_v2 }
 0x4cd   : > { %2038 = vmatmul.mubr.msk.bf16.vlgmr.msra.gmra.mrb[16].mxu0 %vm875_vm3, %v1113_v25  ;;  %v1936_v25 = vld [vmem:[%s781_s25] ss:$0 sm:$0xff] }
 0x4ce   : > { %2053 = vmatprep.mubr.msk.bf16.mxu0 %vm2521_vm1, %v2520_v2  ;;  %2044 = vmatpush3.bf16.msra.mxu1 %v2204_v31 }
 0x4cf   : > { %2057 = vmatprep.subr.bf16.mxu1 %v2520_v2  ;;  %2050 = vmatpush3.bf16.msra.mxu0 %v2205_v0 }
 0x4d0   : > { %2051 = vmatprep.subr.bf16.mxu0 %v2520_v2 }
 0x4d3   : > { %2052 = vmatpush3.bf16.msra.mxu0 %v2206_v1 }
 0x533   : > { %v1157_v26 = vpop.f32.mrb[8].mxu1 }
 0x534   : > { %v2021_v27 = vpop.f32.mrb[9].mxu1 }
 0x535   : > { %v1160_v28 = vpop.f32.mrb[10].mxu1 }
 0x536   : > { %v2022_v29 = vpop.f32.mrb[11].mxu1 }
 0x598   : > { %v1205_v32 = vpop.f32.mrb[12].mxu0 }
 0x599   : > { %1308 = vrot.lane.b32.xlu1 %v1205_v32, %s2527_s14  ;;  %v2027_v33 = vpop.f32.mrb[13].mxu0 }
 0x59a   : > { %v1208_v34 = vpop.f32.mrb[14].mxu0 }
 0x59b   : > { %v2028_v35 = vpop.f32.mrb[15].mxu0 }
 0x59c   : > { %v1253_v36 = vpop.f32.mrb[12].mxu1 }
 0x59d   : > { %1312 = vrot.lane.b32.xlu0 %v1253_v36, %s2528_s6  ;;  %v2033_v37 = vpop.f32.mrb[13].mxu1 }
 0x59e   : > { %v1256_v38 = vpop.f32.mrb[14].mxu1 }
 0x59f   : > { %v2034_v39 = vpop.f32.mrb[15].mxu1 }
 0x5a0   : > { %v1301_v40 = vpop.f32.mrb[16].mxu0 }
 0x5a1   : > { %1316 = vrot.lane.b32.xlu1 %v1301_v40, %s2529_s30  ;;  %v2039_v41 = vpop.f32.mrb[17].mxu0 }
 0x5a2   : > { %v1304_v42 = vpop.f32.mrb[18].mxu0  ;;  %v1942_v41 = vld [vmem:[%s784_s13] ss:$0 sm:$0xff] }
 0x5a3   : > { %v2040_v43 = vpop.f32.mrb[19].mxu0 }
 0x5a4   : > { %v1943_v43 = vld [vmem:[%s787_s2] ss:$0 sm:$0xff]  ;;  %s3325_s2 = sld [smem:[#allocation45_spill]] (!%p1944_p7) }
 0x60b   : > { %v1309_v44 = vpop.permute.xlu1 %1308 }
 0x60c   : > { %v1319_v46 = vsel %vm875_vm3, %v1157_v26, %v1309_v44 }
 0x60f   : > { %v1313_v45 = vpop.permute.xlu0 %1312 }
 0x610   : > { %v1321_v47 = vsel %vm1320_vm5, %v1319_v46, %v1313_v45 }
 0x613   : > { %v1317_v48 = vpop.permute.xlu1 %1316 }
 0x614   : > { %v1323_v49 = vsel %vm1322_vm6, %v1321_v47, %v1317_v48 }
 0x615   : > { %v1324_v50 = vpack.c.bf16 %v1323_v49, %v1323_v49 }
 0x617   : > { %2046 = vmatmul.mubr.msk.bf16.vlgmr.msra.gmra.mrb[16].mxu1 %vm821_vm2, %v1324_v50 }
 0x618   : > { %2065 = vmatprep.mubr.msk.bf16.mxu1 %vm2521_vm1, %v2520_v2 }
 0x6ea   : > { %v1385_v52 = vpop.f32.mrb[16].mxu1 }
 0x6eb   : > { %v1386_v53 = vadd.f32 %v1926_v51, %v1385_v52  ;;  %v2047_v54 = vpop.f32.mrb[17].mxu1 }
 0x6ec   : > { %v1388_v55 = vpop.f32.mrb[18].mxu1 }
 0x6ed   : > { %v2048_v56 = vpop.f32.mrb[19].mxu1  ;;  %v1391_v57 = vadd.f32 %v1386_v53, %v3001_v4  ;;  %v2207_v4 = vld [vmem:[%s2979_s18] sm:$0xff]  }
 0x6ee   : > { %2058 = vmatpush3.bf16.msra.mxu1 %v2207_v4  ;;  %v1945_v56 = vld [vmem:[%s3325_s2] ss:$0 sm:$0xff] (!%p1944_p7) }
 0x6ef   : > { %v1394_v58 = vsel %vm821_vm2, %v1391_v57, 0.0  ;;  %2059 = vmatprep.subr.bf16.mxu1 %v2520_v2 }
 0x6f0   : > { %1395 = vadd.xlane.f32.xlu0 %v1394_v58  ;;  %v1946_v58 = vld [vmem:[%s3326_s21] ss:$0 sm:$0xff] (!%p1944_p7) }
 0x6f2   : > { %2060 = vmatpush3.bf16.msra.mxu1 %v2208_v3 }
 0x6f3   : > { %2061 = vmatprep.subr.bf16.mxu1 %v2520_v2 }
 0x6f6   : > { %2062 = vmatpush3.bf16.msra.mxu1 %v2209_v16 }
 0x6f7   : > { %2063 = vmatprep.subr.bf16.mxu1 %v2520_v2 }
 0x6fa   : > { %2064 = vmatpush3.bf16.msra.mxu1 %v2210_v13 }
 0x77d   : > { %v1396_v59 = vpop.xlane.xlu0 %1395 }
 0x77e   : > { %v1398_v60 = vmul.f32 0.03125, %v1396_v59 }
 0x780   : > { %v1399_v61 = vsub.f32 %v1391_v57, %v1398_v60 }
 0x782   : > { %v1400_v62 = vmul.f32 %v1399_v61, %v1399_v61 }
 0x784   : > { %v1401_v63 = vsel %vm821_vm2, %v1400_v62, 0.0 }
 0x785   : > { %1402 = vadd.xlane.f32.xlu1 %v1401_v63 }
 0x812   : > { %v1403_v5 = vpop.xlane.xlu1 %1402 }
 0x813   : > { %v1404_v6 = vmul.f32 0.03125, %v1403_v5 }
 0x815   : > { %v1405_v7 = vadd.f32 1e-12, %v1404_v6 }
 0x817   : > { %2227 = vrsqrt.f32 %v1405_v7 }
 0x821   : > { %v2228_v8 = vpop.eup %2227 }
 0x822   : > { %v1407_v10 = vmul.f32 %v2228_v8, %v1399_v61 }
 0x824   : > { %v1414_v12 = vmul.f32 %v1930_v9, %v1407_v10 }
 0x826   : > { %v1421_v14 = vadd.f32 %v1931_v11, %v1414_v12 }
 0x828   : > { %v1422_v15 = vpack.c.bf16 %v1421_v14, %v1421_v14 }
 0x82a   : > { %2054 = vmatmul.mubr.msk.bf16.vlgmr.msra.gmra.mrb[20].mxu0 %vm821_vm2, %v1422_v15 }
 0x8fd   : > { %v1483_v18 = vpop.f32.mrb[20].mxu0 }
 0x8fe   : > { %v1484_v19 = vadd.f32 %v1932_v17, %v1483_v18  ;;  %v2055_v20 = vpop.f32.mrb[21].mxu0 }
 0x8ff   : > { %v1486_v21 = vpop.f32.mrb[22].mxu0 }
 0x900   : > { %v1489_v22 = vmax.f32 %v1484_v19, 0.0  ;;  %v2056_v23 = vpop.f32.mrb[23].mxu0 }
 0x902   : > { %v1490_v24 = vpack.c.bf16 %v1489_v22, %v1489_v22 }
 0x904   : > { %2066 = vmatmul.mubr.msk.bf16.vlgmr.msra.gmra.mrb[20].mxu1 %vm1530_vm7, %v1490_v24 }
 0x9d7   : > { %v1568_v26 = vpop.f32.mrb[20].mxu1 }
 0x9d8   : > { %v1569_v2 = vadd.f32 %v1936_v25, %v1568_v26  ;;  %v2067_v27 = vpop.f32.mrb[21].mxu1 }
 0x9d9   : > { %v1571_v28 = vpop.f32.mrb[22].mxu1 }
 0x9da   : > { %v2068_v29 = vpop.f32.mrb[23].mxu1  ;;  %v1574_v30 = vadd.f32 %v1569_v2, %v1421_v14 }
 0x9dc   : > { %v1577_v31 = vsel %vm821_vm2, %v1574_v30, 0.0 }
 0x9dd   : > { %1578 = vadd.xlane.f32.xlu0 %v1577_v31 }
 0xa6a   : > { %v1579_v32 = vpop.xlane.xlu0 %1578 }
 0xa6b   : > { %v1580_v33 = vmul.f32 0.03125, %v1579_v32 }
 0xa6d   : > { %v1581_v34 = vsub.f32 %v1574_v30, %v1580_v33 }
 0xa6f   : > { %v1582_v35 = vmul.f32 %v1581_v34, %v1581_v34 }
 0xa71   : > { %v1583_v36 = vsel %vm821_vm2, %v1582_v35, 0.0 }
 0xa72   : > { %1584 = vadd.xlane.f32.xlu0 %v1583_v36 }
 0xaff   : > { %v1585_v37 = vpop.xlane.xlu0 %1584 }
 0xb00   : > { %v1586_v38 = vmul.f32 0.03125, %v1585_v37 }
 0xb02   : > { %v1587_v39 = vadd.f32 1e-12, %v1586_v38 }
 0xb04   : > { %2229 = vrsqrt.f32 %v1587_v39 }
 0xb0e   : > { %v2230_v40 = vpop.eup %2229 }
 0xb0f   : > { %v1589_v42 = vmul.f32 %v2230_v40, %v1581_v34  ;;  %1608 = sbr.rel (%p1944_p7) target bundleno = 3151 (0xc4f), region = 108 }
 0xb11   : > { %v1596_v44 = vmul.f32 %v1942_v41, %v1589_v42 }
 0xb13   : > { %v1603_v45 = vadd.f32 %v1943_v43, %v1596_v44 }
 0xb15   : > { %1604 = vst.msk [vmem:[#allocation2] sm:$0xff] %vm821_vm2, %v1603_v45  ;;  %v1611_v46 = vsel (!%p1944_p7), %vm821_vm2, %v1603_v45, 0.0 }
 0xb16   : > { %1612 = vadd.xlane.f32.xlu0 %v1611_v46 }
 0xba3   : > { %v1613_v47 = vpop.xlane.xlu0 %1612 }
 0xba4   : > { %v1614_v48 = vmul.f32 0.03125, %v1613_v47 }
 0xba6   : > { %v1615_v49 = vsub.f32 %v1603_v45, %v1614_v48 }
 0xba8   : > { %v1616_v50 = vmul.f32 %v1615_v49, %v1615_v49 }
 0xbaa   : > { %v1617_v51 = vsel %vm821_vm2, %v1616_v50, 0.0 }
 0xbab   : > { %1618 = vadd.xlane.f32.xlu0 %v1617_v51 }
 0xc38   : > { %v1619_v52 = vpop.xlane.xlu0 %1618 }
 0xc39   : > { %v1620_v53 = vmul.f32 0.03125, %v1619_v52 }
 0xc3b   : > { %v1621_v54 = vadd.f32 1e-12, %v1620_v53 }
 0xc3d   : > { %2231 = vrsqrt.f32 %v1621_v54 }
 0xc47   : > { %v2232_v55 = vpop.eup %2231 }
 0xc48   : > { %v1623_v57 = vmul.f32 %v2232_v55, %v1615_v49 }
 0xc4a   : > { %v1630_v59 = vmul.f32 %v1945_v56, %v1623_v57 }
 0xc4c   : > { %v1637_v60 = vadd.f32 %v1946_v58, %v1630_v59 }
 0xc4e   : > { %1638 = vst.msk [vmem:[%s2994_s12] sm:$0xff] %vm821_vm2, %v1637_v60 }
 0xc4f PF: > { %s3327_s22 = sld [smem:[#allocation23_spill]]  ;;  %s3328_s1 = sld [smem:[#allocation47_spill]] }
 0xc50   : > { %s1653_s6 = sshll.u32 %s2994_s12, 4  ;;  %s1640_s30 = scalar_lea.sflag [#allocation5], %s2930_s26  ;;  %s1654_s6 = int_to_ptr.vmem [resolvable:$true] %s1653_s6 }
 0xc51   : > { %s2383_s10 = scalar_lea.vmem %s1654_s6, 128  ;;  %p3329_p13 = scmp.ne.s32.totalorder %s3292_s20, 0 }
 0xc52   : > { %p2384_p12 = scmp.ne.s32.totalorder %s1654_s6, %s2383_s10  ;;  %s2530_s29 = smov [#allocation12]  }
 0xc53   : > { %s2387_s27 = sshll.u32 %s2530_s29, 4  ;;  %s2388_s27 = int_to_ptr.vmem [resolvable:$false] %s2387_s27 }
 0xc54   : > { %p2385_p0 = pnand %p2384_p12, %p3329_p13  ;;  %s2389_s17 = scalar_lea.vmem %s2388_s27, 256 }
 0xc55   : > { %s1948_s23 = sshll.u32 %s3327_s22, 7  ;;  %p2390_p1 = scmp.lt.s32.totalorder %s1654_s6, %s2388_s27 }
 0xc56   : > { %s3150_s14 = scalar_lea.hbm %s3328_s1, %s1948_s23  ;;  %p2386_p4 = pneg %p2385_p0 }
 0xc57   : > { %p2391_p3 = scmp.lt.s32.totalorder %s2389_s17, %s2383_s10 }
 0xc59   : > { %p2392_p5 = por %p2391_p3, %p2390_p1 }
 0xc5b   : > { %p2393_p10 = pnand %p2392_p5, %p2386_p4 }
 0xc5d   : > { %2396 = shalt.err (!%p2393_p10)
}
 0xc5e   : > { %s2397_s26 = scalar_lea.hbm %s3150_s14, 128  ;;  %s2401_s11 = scalar_lea.hbm %s3328_s1, 256 }
 0xc5f   : > { %p2398_p8 = scmp.ne.s32.totalorder %s3150_s14, %s2397_s26  ;;  %p2402_p2 = scmp.lt.u32.totalorder %s3150_s14, %s3328_s1 }
 0xc60   : > { %p2403_p6 = scmp.lt.u32.totalorder %s2401_s11, %s2397_s26  ;;  %p2405_p12 = scmp.lt.u32.totalorder %s2397_s26, %s3150_s14 }
 0xc61   : > { %p2399_p11 = pnand %p2398_p8, %p3329_p13 }
 0xc62   : > { %p2404_p7 = por %p2403_p6, %p2402_p2 }
 0xc63   : > { %p2400_p9 = pneg %p2399_p11 }
 0xc64   : > { %p2406_p0 = por %p2405_p12, %p2404_p7 }
 0xc66   : > { %p2407_p4 = pnand %p2406_p0, %p2400_p9 }
 0xc68   : > { %2410 = shalt.err (!%p2407_p4)
}
 0xc69   : > { %2079 = dma.vmem_to_hbm [thread:$0]  (%p3329_p13), %s1654_s6, 128, %s3150_s14, %s1640_s30  }
 0xc6a PF: > { %s3330_s25 = sld [smem:[#allocation19_spill]]  ;;  %s3331_s3 = sld [smem:[#allocation31_spill]] }
 0xc6b   : > { %p2102_p1 = scmp.ge.s32.totalorder %s2513_s28, 2 }
 0xc70   : > { %s1665_s16 = sand.u32 1, %s3330_s25   ;;  %p3332_p3 = scmp.ne.s32.totalorder %s3331_s3, 0 }
 0xc71   : > { %s1666_s0 = scalar_lea.sflag [#allocation5], %s1665_s16 }
 0xc72   : > { %p2098_p5 = pnand %p2102_p1, %p3332_p3 }
 0xc74   : > { %2468 = dma.done.wait (!%p2098_p5), %s1666_s0, 128  }
 0xc75   : > { %2470 = vsyncadd (!%p2098_p5), %s1666_s0, 4294967168  ;;  %s37_s28 = sadd.s32 1, %s2513_s28   ;;  %s3333_s18 = sld [smem:[#allocation17_spill]] }
 0xc76   : > { %p34_p10 = scmp.ge.s32.totalorder %s37_s28, 6   ;;  %s3334_s19 = sld [smem:[#allocation18_spill]] }
 0xc77   : > { %s3335_s20 = sld [smem:[#allocation27_spill]]  ;;  %s3336_s21 = sld [smem:[#allocation20_spill]] }
 0xc78   : > { %s3337_s22 = sld [smem:[#allocation21_spill]]  ;;  %s3338_s23 = sld [smem:[#allocation30_spill]] }
 0xc79   : > { %s3339_s24 = sld [smem:[#allocation24_spill]]  ;;  %s3340_s25 = sld [smem:[#allocation25_spill]] }
 0xc7a   : > { %s3341_s26 = sld [smem:[#allocation26_spill]]  ;;  %s3342_s27 = sld [smem:[#allocation28_spill]] }
 0xc7b   :  { %36 = sbr.rel (!%p34_p10) target bundleno = 30 (0x1e), region = 205 }
 0xc82   :  { %1671 = vsyncpa [#allocation4], 1 }
 0xc83   :  { %1673 = vsyncpa [#allocation4 + $0x1], 1 }
 0xc84   :  { %1674 = vsyncpa [#allocation7], 1 }
 0xc85   :  { %1676 = vsyncpa [#allocation7 + $0x1], 1 }
 0xc86   :  { %1677 = vsyncpa [#allocation10], 1 }
 0xc87   :  { %1679 = vsyncpa [#allocation10 + $0x1], 1 }
 0xc88   :  { %1680 = vsyncpa [#allocation5], 1 }
 0xc89   :  { %1682 = vsyncpa [#allocation5 + $0x1], 1 }

</bundles_post_ra>
